<compile_context>
chip_gen: v7x
topology: tpu7x:2x2x1
jax: 0.10.0
libtpu: 0.0.40
codegen_flags: <defaults>
</compile_context>

<pallas_src>
import functools

import jax
import jax.numpy as jnp
from jax import lax
from jax.experimental import pallas as pl
from jax.experimental.pallas import tpu as pltpu

EPS = 1e-5
VMEM_LIMIT = 32 * 1024 * 1024        # explicit scoped-VMEM budget (fits all gens)


# --------------------------------------------------------------------------
# tiling helpers
# --------------------------------------------------------------------------
def _pick_tile_m(m, row_bytes):
    """Largest row-tile that divides m, keeps the per-tile working set small
    (<=2 MiB, so double-buffering fits easily even in v7x's 64 MiB VMEM) and
    leaves >=4 grid steps for pipelining when m is big enough."""
    cap = max(8, (2 * 1024 * 1024) // max(int(row_bytes), 1))
    cands = [t for t in (8192, 4096, 2048, 1024, 512, 256, 128, 64, 32, 16, 8)
             if t <= cap]
    for t in cands:
        if m % t == 0 and m // t >= 4:
            return t
    for t in cands:
        if m % t == 0:
            return t
    return m


def _pick_tile_rows(h, w, c):
    """Row tile for the deconv kernel: per-phase f32 accumulator (tr*W*C) must
    stay comfortably in registers/VMEM; prefer >=2 row blocks per image so the
    grid has enough steps to pipeline."""
    budget_elems = (64 * 1024) // 4          # <=64 KiB f32 accumulator
    best = 1
    for tr in range(1, h + 1):
        if h % tr == 0 and tr * w * c <= budget_elems:
            best = tr
    if best == h and h > 1:
        for tr in range(h - 1, 0, -1):
            if h % tr == 0 and tr * w * c <= budget_elems:
                return tr
    return best


def _phase_taps(stride, phase):
    """Sub-pixel taps along one axis of a k=3, pad=1, output_padding=stride-1
    transposed conv: out[m*stride + phase] += x[m + d] * w[k] for (k, d)."""
    taps = []
    for k in range(3):
        t = phase + 1 - k                    # (o + pad - k) must be divisible by stride
        if t % stride == 0:
            taps.append((k, t // stride))
    return taps


# --------------------------------------------------------------------------
# Kernel 1 & 3: fused [optional BN+ReLU prologue] -> 1x1 conv (matmul)
#               -> bf16 output + per-tile BN partial sums / sum-of-squares
# --------------------------------------------------------------------------
def _mm_bn_stats_kernel(*refs, fuse_in):
    if fuse_in:
        x_ref, w_ref, sc_ref, bs_ref, y_ref, ps_ref, sq_ref = refs
    else:
        x_ref, w_ref, y_ref, ps_ref, sq_ref = refs

    x = x_ref[...].astype(jnp.float32)
    if fuse_in:
        # previous stage's BatchNorm folded to (scale, bias), then ReLU
        x = jnp.maximum(x * sc_ref[...] + bs_ref[...], 0.0)

    y = jnp.dot(x.astype(jnp.bfloat16), w_ref[...],
                preferred_element_type=jnp.float32)
    yb = y.astype(y_ref.dtype)
    y_ref[...] = yb

    # BN statistics of exactly the values that were stored (bf16-rounded).
    yf = yb.astype(jnp.float32)
    s = jnp.sum(yf, axis=0, keepdims=True)
    q = jnp.sum(yf * yf, axis=0, keepdims=True)
    rows = lax.broadcasted_iota(jnp.int32, ps_ref.shape, 0)
    ps_ref[...] = jnp.where(rows == 0, s, 0.0)     # row 0 carries the partial sum
    sq_ref[...] = jnp.where(rows == 0, q, 0.0)


def matmul_bn_stats(x2d, w, in_scale=None, in_bias=None):
    m, cin = x2d.shape
    cout = w.shape[1]
    fuse = in_scale is not None

    row_bytes = cin * x2d.dtype.itemsize + cout * 2
    tm = _pick_tile_m(m, row_bytes)
    nt = m // tm

    in_specs = [pl.BlockSpec((tm, cin), lambda i: (i, 0)),
                pl.BlockSpec((cin, cout), lambda i: (0, 0))]
    args = [x2d, w]
    if fuse:
        in_specs += [pl.BlockSpec((1, cin), lambda i: (0, 0)),
                     pl.BlockSpec((1, cin), lambda i: (0, 0))]
        args += [in_scale.reshape(1, cin).astype(jnp.float32),
                 in_bias.reshape(1, cin).astype(jnp.float32)]

    y, ps, sq = pl.pallas_call(
        functools.partial(_mm_bn_stats_kernel, fuse_in=fuse),
        out_shape=(jax.ShapeDtypeStruct((m, cout), jnp.bfloat16),
                   jax.ShapeDtypeStruct((nt * 8, cout), jnp.float32),
                   jax.ShapeDtypeStruct((nt * 8, cout), jnp.float32)),
        grid=(nt,),
        in_specs=in_specs,
        out_specs=(pl.BlockSpec((tm, cout), lambda i: (i, 0)),
                   pl.BlockSpec((8, cout), lambda i: (i, 0)),
                   pl.BlockSpec((8, cout), lambda i: (i, 0))),
        compiler_params=pltpu.CompilerParams(
            dimension_semantics=("parallel",),
            vmem_limit_bytes=VMEM_LIMIT),
    )(*args)
    return y, ps.sum(axis=0), sq.sum(axis=0)


# --------------------------------------------------------------------------
# Kernel 2: fused BN1+ReLU prologue -> ConvTranspose2d 3x3 (stride s) via
#           sub-pixel phases -> bf16 phase-separated output + BN2 partial stats
# --------------------------------------------------------------------------
def _deconv_bn_kernel(x_ref, w_ref, sc_ref, bs_ref, y_ref, ps_ref, sq_ref, xpad,
                      *, stride, tr):
    # x_ref : (1, H, W, C)  raw (pre-BN) bf16 input, whole image (stays resident
    #                       across the inner row-block axis of the grid)
    # w_ref : (3, 3, C, C)  ConvTranspose weights (in,out per tap), bf16
    # sc/bs : (1, C)        folded BN1 scale / bias (f32)
    # y_ref : (1, s*s, tr, W, C) phase-separated bf16 output row-block
    # ps/sq : (8, C)        per-step partial stats (row 0 holds the sums)
    # xpad  : VMEM (tr+2, W+2, C) f32: BN+ReLU'd rows with a zero halo
    h, w, c = x_ref.shape[1], x_ref.shape[2], x_ref.shape[3]
    row0 = pl.program_id(1) * tr

    def bn_relu(v):
        return jnp.maximum(v.astype(jnp.float32) * sc_ref[...] + bs_ref[...], 0.0)

    # Build the zero-padded, BN+ReLU'd tile covering input rows row0-1 .. row0+tr.
    xpad[...] = jnp.zeros(xpad.shape, xpad.dtype)
    xpad[1:tr + 1, 1:w + 1, :] = bn_relu(x_ref[0, pl.ds(row0, tr), :, :])

    @pl.when(row0 > 0)
    def _():
        xpad[0:1, 1:w + 1, :] = bn_relu(x_ref[0, pl.ds(row0 - 1, 1), :, :])

    @pl.when(row0 + tr < h)
    def _():
        xpad[tr + 1:tr + 2, 1:w + 1, :] = bn_relu(x_ref[0, pl.ds(row0 + tr, 1), :, :])

    taps = [_phase_taps(stride, p) for p in range(stride)]
    phase_out = []
    tot_s = jnp.zeros((1, c), jnp.float32)
    tot_q = jnp.zeros((1, c), jnp.float32)

    for ph in range(stride):
        for pw in range(stride):
            acc = jnp.zeros((tr * w, c), jnp.float32)
            for kh, dh in taps[ph]:
                for kw, dw in taps[pw]:
                    patch = xpad[1 + dh:1 + dh + tr, 1 + dw:1 + dw + w, :]
                    acc = acc + jnp.dot(
                        patch.reshape(tr * w, c).astype(jnp.bfloat16),
                        w_ref[kh, kw],
                        preferred_element_type=jnp.float32)
            yb = acc.astype(y_ref.dtype)
            phase_out.append(yb)
            yf = yb.astype(jnp.float32)
            tot_s = tot_s + jnp.sum(yf, axis=0, keepdims=True)
            tot_q = tot_q + jnp.sum(yf * yf, axis=0, keepdims=True)

    y_ref[...] = jnp.stack(phase_out, axis=0).reshape(y_ref.shape)

    rows = lax.broadcasted_iota(jnp.int32, ps_ref.shape, 0)
    ps_ref[...] = jnp.where(rows == 0, tot_s, 0.0)
    sq_ref[...] = jnp.where(rows == 0, tot_q, 0.0)


def deconv3x3_bn_stats(y_nhwc, w_taps, in_scale, in_bias, stride):
    n, h, w, c = y_nhwc.shape
    tr = _pick_tile_rows(h, w, c)
    nr = h // tr
    ss = stride * stride
    # TODO(synk): for very large H*W the per-image input block should itself be
    # split (halo exchange) to respect v7x's 64 MiB VMEM; fine at these sizes.
    y2, ps, sq = pl.pallas_call(
        functools.partial(_deconv_bn_kernel, stride=stride, tr=tr),
        out_shape=(jax.ShapeDtypeStruct((n, ss, h, w, c), jnp.bfloat16),
                   jax.ShapeDtypeStruct((n * nr * 8, c), jnp.float32),
                   jax.ShapeDtypeStruct((n * nr * 8, c), jnp.float32)),
        grid=(n, nr),
        in_specs=[pl.BlockSpec((1, h, w, c), lambda b, r: (b, 0, 0, 0)),
                  pl.BlockSpec((3, 3, c, c), lambda b, r: (0, 0, 0, 0)),
                  pl.BlockSpec((1, c), lambda b, r: (0, 0)),
                  pl.BlockSpec((1, c), lambda b, r: (0, 0))],
        out_specs=(pl.BlockSpec((1, ss, tr, w, c), lambda b, r: (b, 0, r, 0, 0)),
                   pl.BlockSpec((8, c), lambda b, r: (b * nr + r, 0)),
                   pl.BlockSpec((8, c), lambda b, r: (b * nr + r, 0))),
        scratch_shapes=[pltpu.VMEM((tr + 2, w + 2, c), jnp.float32)],
        compiler_params=pltpu.CompilerParams(
            dimension_semantics=("parallel", "arbitrary"),
            vmem_limit_bytes=VMEM_LIMIT),
    )(y_nhwc, w_taps,
      in_scale.reshape(1, c).astype(jnp.float32),
      in_bias.reshape(1, c).astype(jnp.float32))
    return y2, ps.sum(axis=0), sq.sum(axis=0)


# --------------------------------------------------------------------------
# Kernel 4: final BN+ReLU apply
# --------------------------------------------------------------------------
def _bn_relu_kernel(x_ref, sc_ref, bs_ref, o_ref):
    x = x_ref[...].astype(jnp.float32)
    o_ref[...] = jnp.maximum(x * sc_ref[...] + bs_ref[...], 0.0)


def bn_relu_apply(x2d, scale, bias):
    m, c = x2d.shape
    tm = _pick_tile_m(m, c * (x2d.dtype.itemsize + 4))
    return pl.pallas_call(
        _bn_relu_kernel,
        out_shape=jax.ShapeDtypeStruct((m, c), jnp.float32),
        grid=(m // tm,),
        in_specs=[pl.BlockSpec((tm, c), lambda i: (i, 0)),
                  pl.BlockSpec((1, c), lambda i: (0, 0)),
                  pl.BlockSpec((1, c), lambda i: (0, 0))],
        out_specs=pl.BlockSpec((tm, c), lambda i: (i, 0)),
        compiler_params=pltpu.CompilerParams(
            dimension_semantics=("parallel",),
            vmem_limit_bytes=VMEM_LIMIT),
    )(x2d, scale.reshape(1, c).astype(jnp.float32),
      bias.reshape(1, c).astype(jnp.float32))


# --------------------------------------------------------------------------
# BatchNorm folding (tiny per-channel vectors, plain jnp)
# --------------------------------------------------------------------------
def _fold_bn(s, q, count, gamma, beta):
    mean = s / count
    # TODO(synk): E[x^2]-E[x]^2 can cancel for huge-mean activations; use a
    # centered / Welford pass for production-sized tensors.
    var = q / count - mean * mean                    # biased, as in torch BN fwd
    istd = lax.rsqrt(var + EPS)
    scale = gamma.astype(jnp.float32) * istd
    bias = beta.astype(jnp.float32) - mean * scale
    return scale, bias


# --------------------------------------------------------------------------
# parameters (deterministic, synthetic) — PyTorch weight layouts
# --------------------------------------------------------------------------
def init_params(key, inplanes, planes):
    cmid = inplanes // 4
    ks = jax.random.split(key, 9)
    return {
        "w1": 0.2 * jax.random.normal(ks[0], (cmid, inplanes, 1, 1), jnp.float32),
        "wt": 0.2 * jax.random.normal(ks[1], (cmid, cmid, 3, 3), jnp.float32),
        "w3": 0.2 * jax.random.normal(ks[2], (planes, cmid, 1, 1), jnp.float32),
        "g1": 1.0 + 0.1 * jax.random.normal(ks[3], (cmid,), jnp.float32),
        "b1": 0.1 * jax.random.normal(ks[4], (cmid,), jnp.float32),
        "g2": 1.0 + 0.1 * jax.random.normal(ks[5], (cmid,), jnp.float32),
        "b2": 0.1 * jax.random.normal(ks[6], (cmid,), jnp.float32),
        "g3": 1.0 + 0.1 * jax.random.normal(ks[7], (planes,), jnp.float32),
        "b3": 0.1 * jax.random.normal(ks[8], (planes,), jnp.float32),
    }


# --------------------------------------------------------------------------
# full DecoderBlock forward (Pallas)
# --------------------------------------------------------------------------
def decoder_block_forward(x_nchw, params, stride=1):
    n, cin, h, w = x_nchw.shape
    cmid = params["w1"].shape[0]
    planes = params["w3"].shape[0]
    s = stride

    x = jnp.transpose(x_nchw, (0, 2, 3, 1)).astype(jnp.float32)   # NHWC
    x2d = x.reshape(n * h * w, cin)

    # stage 1: 1x1 conv + BN1 stats
    w1 = params["w1"][:, :, 0, 0].T.astype(jnp.bfloat16)           # (Cin, Cmid)
    y1, s1, q1 = matmul_bn_stats(x2d, w1)
    sc1, bs1 = _fold_bn(s1, q1, n * h * w, params["g1"], params["b1"])

    # stage 2: ConvTranspose2d 3x3 (sub-pixel phases) with BN1+ReLU prologue
    wt = jnp.transpose(params["wt"], (2, 3, 0, 1)).astype(jnp.bfloat16)  # (3,3,in,out)
    y2, s2, q2 = deconv3x3_bn_stats(y1.reshape(n, h, w, cmid), wt, sc1, bs1, s)
    cnt2 = n * s * s * h * w
    sc2, bs2 = _fold_bn(s2, q2, cnt2, params["g2"], params["b2"])

    # stage 3: 1x1 conv with BN2+ReLU prologue + BN3 stats
    w3 = params["w3"][:, :, 0, 0].T.astype(jnp.bfloat16)           # (Cmid, planes)
    y3, s3, q3 = matmul_bn_stats(y2.reshape(cnt2, cmid), w3, in_scale=sc2, in_bias=bs2)
    sc3, bs3 = _fold_bn(s3, q3, cnt2, params["g3"], params["b3"])

    # stage 4: final BN3+ReLU
    out = bn_relu_apply(y3, sc3, bs3)                              # (cnt2, planes) f32

    # phase-separated (n, ph, pw, h, w, c) -> NCHW with interleaved phases
    out = out.reshape(n, s, s, h, w, planes)
    out = jnp.transpose(out, (0, 5, 3, 1, 4, 2)).reshape(n, planes, s * h, s * w)
    return out


# --------------------------------------------------------------------------
# pure-JAX references
# --------------------------------------------------------------------------
def reference_forward(x_nchw, params, stride=1, mirror_bf16=True):
    """mirror_bf16=True mirrors the kernel's numerics (bf16 matmul inputs and
    bf16-stored intermediates, f32 accumulation/BN); False is the exact f32
    forward of the PyTorch module."""
    dn = ("NHWC", "HWIO", "NHWC")
    cdt = jnp.bfloat16 if mirror_bf16 else jnp.float32

    def conv(x, w, **kw):
        return lax.conv_general_dilated(x.astype(cdt), w.astype(cdt), (1, 1),
                                        dimension_numbers=dn,
                                        preferred_element_type=jnp.float32, **kw)

    def bn_relu(y, g, b):
        y = y.astype(cdt).astype(jnp.float32)       # mirrors bf16 intermediate storage
        mean = jnp.mean(y, axis=(0, 1, 2))
        var = jnp.mean(y * y, axis=(0, 1, 2)) - mean * mean
        scale = g * lax.rsqrt(var + EPS)
        bias = b - mean * scale
        return jnp.maximum(y * scale + bias, 0.0)

    x = jnp.transpose(x_nchw, (0, 2, 3, 1)).astype(jnp.float32)
    w1 = jnp.transpose(params["w1"], (2, 3, 1, 0))
    y = conv(x, w1, padding="VALID")
    y = bn_relu(y, params["g1"], params["b1"])

    w_eq = jnp.transpose(params["wt"][:, :, ::-1, ::-1], (2, 3, 0, 1))
    op = stride - 1
    y = conv(y, w_eq, padding=((1, 1 + op), (1, 1 + op)),
             lhs_dilation=(stride, stride))
    y = bn_relu(y, params["g2"], params["b2"])

    w3 = jnp.transpose(params["w3"], (2, 3, 1, 0))
    y = conv(y, w3, padding="VALID")
    y = bn_relu(y, params["g3"], params["b3"])
    return jnp.transpose(y, (0, 3, 1, 2))


if __name__ == "__main__":
    key = jax.random.PRNGKey(0)
    k_x, k_p = jax.random.split(key)

    N, INPLANES, PLANES, H, W = 2, 16, 8, 16, 16
    x = jax.random.normal(k_x, (N, INPLANES, H, W), jnp.float32)
    params = init_params(k_p, INPLANES, PLANES)

    fwd = jax.jit(decoder_block_forward, static_argnames=("stride",))

    ok = True
    for stride in (1, 2):
        out = jax.block_until_ready(fwd(x, params, stride=stride))
        assert out.shape == (N, PLANES, H * stride, W * stride), out.shape

        ref_mirror = reference_forward(x, params, stride=stride, mirror_bf16=True)
        ref_f32 = reference_forward(x, params, stride=stride, mirror_bf16=False)

        if not jnp.allclose(out, ref_mirror, atol=2e-3, rtol=2e-3):
            ok = False
            print("MISMATCH(bf16-ref) stride=%d maxerr=%e" %
                  (stride, float(jnp.max(jnp.abs(out - ref_mirror)))))
        if not jnp.allclose(out, ref_f32, atol=1e-1, rtol=1e-1):
            ok = False
            print("MISMATCH(f32-ref) stride=%d maxerr=%e" %
                  (stride, float(jnp.max(jnp.abs(out - ref_f32)))))

    if ok:
        print("KERNEL_OK")
</pallas_src>

<mosaic_0001>
module attributes {stable_mosaic.version = 11 : i64} {
  func.func @_mm_bn_stats_kernel(%arg0: i32, %arg1: memref<128x16xf32, #tpu.memory_space<vmem>>, %arg2: memref<16x4xbf16, #tpu.memory_space<vmem>>, %arg3: memref<128x4xbf16, #tpu.memory_space<vmem>>, %arg4: memref<8x4xf32, #tpu.memory_space<vmem>>, %arg5: memref<8x4xf32, #tpu.memory_space<vmem>>) attributes {dimension_semantics = [#tpu.dimension_semantics<parallel>], iteration_bounds = array<i64: 4>, scalar_prefetch = 0 : i64, scratch_operands = 0 : i64, tpu.core_type = #tpu.core_type<tc>, window_params = [{transform_indices = @transform_0, window_bounds = array<i64: 128, 16>}, {pipeline_mode = #tpu.pipeline_mode<synchronous>, transform_indices = @transform_1, window_bounds = array<i64: 16, 4>}, {transform_indices = @transform_2, window_bounds = array<i64: 128, 4>}, {transform_indices = @transform_3, window_bounds = array<i64: 8, 4>}, {transform_indices = @transform_4, window_bounds = array<i64: 8, 4>}]} {
    %c0 = arith.constant 0 : index
    %c0_0 = arith.constant 0 : index
    %0 = vector.load %arg1[%c0, %c0_0] : memref<128x16xf32, #tpu.memory_space<vmem>>, vector<128x16xf32>
    %1 = arith.truncf %0 : vector<128x16xf32> to vector<128x16xbf16>
    %c0_1 = arith.constant 0 : index
    %c0_2 = arith.constant 0 : index
    %2 = vector.load %arg2[%c0_1, %c0_2] : memref<16x4xbf16, #tpu.memory_space<vmem>>, vector<16x4xbf16>
    %cst = arith.constant dense<0.000000e+00> : vector<128x4xf32>
    %3 = tpu.matmul %1, %2, %cst {dimension_numbers = #tpu.dot_dimension_numbers<[1], [0], [0], [1], [0, 0, 1, 1], [], []>} : vector<128x16xbf16>, vector<16x4xbf16>, vector<128x4xf32> -> vector<128x4xf32>
    %4 = arith.truncf %3 : vector<128x4xf32> to vector<128x4xbf16>
    %c0_3 = arith.constant 0 : index
    %c0_4 = arith.constant 0 : index
    %5 = vector.load %arg3[%c0_3, %c0_4] : memref<128x4xbf16, #tpu.memory_space<vmem>>, vector<128x4xbf16>
    tpu.vector_store %arg3[%c0_3, %c0_4], %4 {strides = array<i32>} : memref<128x4xbf16, #tpu.memory_space<vmem>>, vector<128x4xbf16>,
    %6 = arith.extf %4 : vector<128x4xbf16> to vector<128x4xf32>
    %cst_5 = arith.constant dense<0.000000e+00> : vector<4xf32>
    %7 = vector.multi_reduction <add>, %6, %cst_5 [0] : vector<128x4xf32> to vector<4xf32>
    %8 = vector.shape_cast %7 : vector<4xf32> to vector<1x4xf32>
    %9 = arith.mulf %6, %6 : vector<128x4xf32>
    %cst_6 = arith.constant dense<0.000000e+00> : vector<4xf32>
    %10 = vector.multi_reduction <add>, %9, %cst_6 [0] : vector<128x4xf32> to vector<4xf32>
    %11 = vector.shape_cast %10 : vector<4xf32> to vector<1x4xf32>
    %12 = tpu.iota {dimensions = array<i32: 0>} : vector<8x4xi32>
    %c0_i32 = arith.constant 0 : i32
    %13 = vector.broadcast %c0_i32 : i32 to vector<8x4xi32>
    %14 = arith.cmpi eq, %12, %13 : vector<8x4xi32>
    %cst_7 = arith.constant 0.000000e+00 : f32
    %15 = vector.shape_cast %8 : vector<1x4xf32> to vector<1x4xf32>
    %16 = vector.broadcast %15 : vector<1x4xf32> to vector<8x4xf32>
    %17 = vector.broadcast %cst_7 : f32 to vector<8x4xf32>
    %18 = arith.select %14, %16, %17 : vector<8x4xi1>, vector<8x4xf32>
    %c0_8 = arith.constant 0 : index
    %c0_9 = arith.constant 0 : index
    %19 = vector.load %arg4[%c0_8, %c0_9] : memref<8x4xf32, #tpu.memory_space<vmem>>, vector<8x4xf32>
    tpu.vector_store %arg4[%c0_8, %c0_9], %18 {strides = array<i32>} : memref<8x4xf32, #tpu.memory_space<vmem>>, vector<8x4xf32>,
    %c0_i32_10 = arith.constant 0 : i32
    %20 = vector.broadcast %c0_i32_10 : i32 to vector<8x4xi32>
    %21 = arith.cmpi eq, %12, %20 : vector<8x4xi32>
    %cst_11 = arith.constant 0.000000e+00 : f32
    %22 = vector.shape_cast %11 : vector<1x4xf32> to vector<1x4xf32>
    %23 = vector.broadcast %22 : vector<1x4xf32> to vector<8x4xf32>
    %24 = vector.broadcast %cst_11 : f32 to vector<8x4xf32>
    %25 = arith.select %21, %23, %24 : vector<8x4xi1>, vector<8x4xf32>
    %c0_12 = arith.constant 0 : index
    %c0_13 = arith.constant 0 : index
    %26 = vector.load %arg5[%c0_12, %c0_13] : memref<8x4xf32, #tpu.memory_space<vmem>>, vector<8x4xf32>
    tpu.vector_store %arg5[%c0_12, %c0_13], %25 {strides = array<i32>} : memref<8x4xf32, #tpu.memory_space<vmem>>, vector<8x4xf32>,
    return
  }
  func.func @transform_0(%arg0: i32) -> (i32, i32) {
    %c0_i32 = arith.constant 0 : i32
    %c0_i32_0 = arith.constant 0 : i32
    return %arg0, %c0_i32 : i32, i32
  }
  func.func @transform_1(%arg0: i32) -> (i32, i32) {
    %c0_i32 = arith.constant 0 : i32
    %c0_i32_0 = arith.constant 0 : i32
    %c0_i32_1 = arith.constant 0 : i32
    return %c0_i32, %c0_i32_0 : i32, i32
  }
  func.func @transform_2(%arg0: i32) -> (i32, i32) {
    %c0_i32 = arith.constant 0 : i32
    %c0_i32_0 = arith.constant 0 : i32
    return %arg0, %c0_i32 : i32, i32
  }
  func.func @transform_3(%arg0: i32) -> (i32, i32) {
    %c0_i32 = arith.constant 0 : i32
    %c0_i32_0 = arith.constant 0 : i32
    return %arg0, %c0_i32 : i32, i32
  }
  func.func @transform_4(%arg0: i32) -> (i32, i32) {
    %c0_i32 = arith.constant 0 : i32
    %c0_i32_0 = arith.constant 0 : i32
    return %arg0, %c0_i32 : i32, i32
  }
}

module attributes {stable_mosaic.version = 11 : i64} {
  func.func @_mm_bn_stats_kernel(%arg0: i32, %arg1: memref<128x4xbf16, #tpu.memory_space<vmem>>, %arg2: memref<4x8xbf16, #tpu.memory_space<vmem>>, %arg3: memref<1x4xf32, #tpu.memory_space<vmem>>, %arg4: memref<1x4xf32, #tpu.memory_space<vmem>>, %arg5: memref<128x8xbf16, #tpu.memory_space<vmem>>, %arg6: memref<8x8xf32, #tpu.memory_space<vmem>>, %arg7: memref<8x8xf32, #tpu.memory_space<vmem>>) attributes {dimension_semantics = [#tpu.dimension_semantics<parallel>], iteration_bounds = array<i64: 4>, scalar_prefetch = 0 : i64, scratch_operands = 0 : i64, tpu.core_type = #tpu.core_type<tc>, window_params = [{transform_indices = @transform_0, window_bounds = array<i64: 128, 4>}, {pipeline_mode = #tpu.pipeline_mode<synchronous>, transform_indices = @transform_1, window_bounds = array<i64: 4, 8>}, {pipeline_mode = #tpu.pipeline_mode<synchronous>, transform_indices = @transform_2, window_bounds = array<i64: 1, 4>}, {pipeline_mode = #tpu.pipeline_mode<synchronous>, transform_indices = @transform_3, window_bounds = array<i64: 1, 4>}, {transform_indices = @transform_4, window_bounds = array<i64: 128, 8>}, {transform_indices = @transform_5, window_bounds = array<i64: 8, 8>}, {transform_indices = @transform_6, window_bounds = array<i64: 8, 8>}]} {
    %c0 = arith.constant 0 : index
    %c0_0 = arith.constant 0 : index
    %0 = vector.load %arg1[%c0, %c0_0] : memref<128x4xbf16, #tpu.memory_space<vmem>>, vector<128x4xbf16>
    %1 = arith.extf %0 : vector<128x4xbf16> to vector<128x4xf32>
    %c0_1 = arith.constant 0 : index
    %c0_2 = arith.constant 0 : index
    %2 = vector.load %arg3[%c0_1, %c0_2] : memref<1x4xf32, #tpu.memory_space<vmem>>, vector<1x4xf32>
    %3 = vector.broadcast %2 : vector<1x4xf32> to vector<128x4xf32>
    %4 = arith.mulf %1, %3 : vector<128x4xf32>
    %c0_3 = arith.constant 0 : index
    %c0_4 = arith.constant 0 : index
    %5 = vector.load %arg4[%c0_3, %c0_4] : memref<1x4xf32, #tpu.memory_space<vmem>>, vector<1x4xf32>
    %6 = vector.broadcast %5 : vector<1x4xf32> to vector<128x4xf32>
    %7 = arith.addf %4, %6 : vector<128x4xf32>
    %cst = arith.constant 0.000000e+00 : f32
    %8 = vector.broadcast %cst : f32 to vector<128x4xf32>
    %9 = arith.maximumf %7, %8 : vector<128x4xf32>
    %10 = arith.truncf %9 : vector<128x4xf32> to vector<128x4xbf16>
    %c0_5 = arith.constant 0 : index
    %c0_6 = arith.constant 0 : index
    %11 = vector.load %arg2[%c0_5, %c0_6] : memref<4x8xbf16, #tpu.memory_space<vmem>>, vector<4x8xbf16>
    %cst_7 = arith.constant dense<0.000000e+00> : vector<128x8xf32>
    %12 = tpu.matmul %10, %11, %cst_7 {dimension_numbers = #tpu.dot_dimension_numbers<[1], [0], [0], [1], [0, 0, 1, 1], [], []>} : vector<128x4xbf16>, vector<4x8xbf16>, vector<128x8xf32> -> vector<128x8xf32>
    %13 = arith.truncf %12 : vector<128x8xf32> to vector<128x8xbf16>
    %c0_8 = arith.constant 0 : index
    %c0_9 = arith.constant 0 : index
    %14 = vector.load %arg5[%c0_8, %c0_9] : memref<128x8xbf16, #tpu.memory_space<vmem>>, vector<128x8xbf16>
    tpu.vector_store %arg5[%c0_8, %c0_9], %13 {strides = array<i32>} : memref<128x8xbf16, #tpu.memory_space<vmem>>, vector<128x8xbf16>,
    %15 = arith.extf %13 : vector<128x8xbf16> to vector<128x8xf32>
    %cst_10 = arith.constant dense<0.000000e+00> : vector<8xf32>
    %16 = vector.multi_reduction <add>, %15, %cst_10 [0] : vector<128x8xf32> to vector<8xf32>
    %17 = vector.shape_cast %16 : vector<8xf32> to vector<1x8xf32>
    %18 = arith.mulf %15, %15 : vector<128x8xf32>
    %cst_11 = arith.constant dense<0.000000e+00> : vector<8xf32>
    %19 = vector.multi_reduction <add>, %18, %cst_11 [0] : vector<128x8xf32> to vector<8xf32>
    %20 = vector.shape_cast %19 : vector<8xf32> to vector<1x8xf32>
    %21 = tpu.iota {dimensions = array<i32: 0>} : vector<8x8xi32>
    %c0_i32 = arith.constant 0 : i32
    %22 = vector.broadcast %c0_i32 : i32 to vector<8x8xi32>
    %23 = arith.cmpi eq, %21, %22 : vector<8x8xi32>
    %cst_12 = arith.constant 0.000000e+00 : f32
    %24 = vector.shape_cast %17 : vector<1x8xf32> to vector<1x8xf32>
    %25 = vector.broadcast %24 : vector<1x8xf32> to vector<8x8xf32>
    %26 = vector.broadcast %cst_12 : f32 to vector<8x8xf32>
    %27 = arith.select %23, %25, %26 : vector<8x8xi1>, vector<8x8xf32>
    %c0_13 = arith.constant 0 : index
    %c0_14 = arith.constant 0 : index
    %28 = vector.load %arg6[%c0_13, %c0_14] : memref<8x8xf32, #tpu.memory_space<vmem>>, vector<8x8xf32>
    tpu.vector_store %arg6[%c0_13, %c0_14], %27 {strides = array<i32>} : memref<8x8xf32, #tpu.memory_space<vmem>>, vector<8x8xf32>,
    %c0_i32_15 = arith.constant 0 : i32
    %29 = vector.broadcast %c0_i32_15 : i32 to vector<8x8xi32>
    %30 = arith.cmpi eq, %21, %29 : vector<8x8xi32>
    %cst_16 = arith.constant 0.000000e+00 : f32
    %31 = vector.shape_cast %20 : vector<1x8xf32> to vector<1x8xf32>
    %32 = vector.broadcast %31 : vector<1x8xf32> to vector<8x8xf32>
    %33 = vector.broadcast %cst_16 : f32 to vector<8x8xf32>
    %34 = arith.select %30, %32, %33 : vector<8x8xi1>, vector<8x8xf32>
    %c0_17 = arith.constant 0 : index
    %c0_18 = arith.constant 0 : index
    %35 = vector.load %arg7[%c0_17, %c0_18] : memref<8x8xf32, #tpu.memory_space<vmem>>, vector<8x8xf32>
    tpu.vector_store %arg7[%c0_17, %c0_18], %34 {strides = array<i32>} : memref<8x8xf32, #tpu.memory_space<vmem>>, vector<8x8xf32>,
    return
  }
  func.func @transform_0(%arg0: i32) -> (i32, i32) {
    %c0_i32 = arith.constant 0 : i32
    %c0_i32_0 = arith.constant 0 : i32
    return %arg0, %c0_i32 : i32, i32
  }
  func.func @transform_1(%arg0: i32) -> (i32, i32) {
    %c0_i32 = arith.constant 0 : i32
    %c0_i32_0 = arith.constant 0 : i32
    %c0_i32_1 = arith.constant 0 : i32
    return %c0_i32, %c0_i32_0 : i32, i32
  }
  func.func @transform_2(%arg0: i32) -> (i32, i32) {
    %c0_i32 = arith.constant 0 : i32
    %c0_i32_0 = arith.constant 0 : i32
    %c0_i32_1 = arith.constant 0 : i32
    return %c0_i32, %c0_i32_0 : i32, i32
  }
  func.func @transform_3(%arg0: i32) -> (i32, i32) {
    %c0_i32 = arith.constant 0 : i32
    %c0_i32_0 = arith.constant 0 : i32
    %c0_i32_1 = arith.constant 0 : i32
    return %c0_i32, %c0_i32_0 : i32, i32
  }
  func.func @transform_4(%arg0: i32) -> (i32, i32) {
    %c0_i32 = arith.constant 0 : i32
    %c0_i32_0 = arith.constant 0 : i32
    return %arg0, %c0_i32 : i32, i32
  }
  func.func @transform_5(%arg0: i32) -> (i32, i32) {
    %c0_i32 = arith.constant 0 : i32
    %c0_i32_0 = arith.constant 0 : i32
    return %arg0, %c0_i32 : i32, i32
  }
  func.func @transform_6(%arg0: i32) -> (i32, i32) {
    %c0_i32 = arith.constant 0 : i32
    %c0_i32_0 = arith.constant 0 : i32
    return %arg0, %c0_i32 : i32, i32
  }
}

module attributes {stable_mosaic.version = 11 : i64} {
  func.func @_bn_relu_kernel(%arg0: i32, %arg1: memref<128x8xbf16, #tpu.memory_space<vmem>>, %arg2: memref<1x8xf32, #tpu.memory_space<vmem>>, %arg3: memref<1x8xf32, #tpu.memory_space<vmem>>, %arg4: memref<128x8xf32, #tpu.memory_space<vmem>>) attributes {dimension_semantics = [#tpu.dimension_semantics<parallel>], iteration_bounds = array<i64: 4>, scalar_prefetch = 0 : i64, scratch_operands = 0 : i64, tpu.core_type = #tpu.core_type<tc>, window_params = [{transform_indices = @transform_0, window_bounds = array<i64: 128, 8>}, {pipeline_mode = #tpu.pipeline_mode<synchronous>, transform_indices = @transform_1, window_bounds = array<i64: 1, 8>}, {pipeline_mode = #tpu.pipeline_mode<synchronous>, transform_indices = @transform_2, window_bounds = array<i64: 1, 8>}, {transform_indices = @transform_3, window_bounds = array<i64: 128, 8>}]} {
    %c0 = arith.constant 0 : index
    %c0_0 = arith.constant 0 : index
    %0 = vector.load %arg1[%c0, %c0_0] : memref<128x8xbf16, #tpu.memory_space<vmem>>, vector<128x8xbf16>
    %1 = arith.extf %0 : vector<128x8xbf16> to vector<128x8xf32>
    %c0_1 = arith.constant 0 : index
    %c0_2 = arith.constant 0 : index
    %2 = vector.load %arg2[%c0_1, %c0_2] : memref<1x8xf32, #tpu.memory_space<vmem>>, vector<1x8xf32>
    %3 = vector.broadcast %2 : vector<1x8xf32> to vector<128x8xf32>
    %4 = arith.mulf %1, %3 : vector<128x8xf32>
    %c0_3 = arith.constant 0 : index
    %c0_4 = arith.constant 0 : index
    %5 = vector.load %arg3[%c0_3, %c0_4] : memref<1x8xf32, #tpu.memory_space<vmem>>, vector<1x8xf32>
    %6 = vector.broadcast %5 : vector<1x8xf32> to vector<128x8xf32>
    %7 = arith.addf %4, %6 : vector<128x8xf32>
    %cst = arith.constant 0.000000e+00 : f32
    %8 = vector.broadcast %cst : f32 to vector<128x8xf32>
    %9 = arith.maximumf %7, %8 : vector<128x8xf32>
    %c0_5 = arith.constant 0 : index
    %c0_6 = arith.constant 0 : index
    %10 = vector.load %arg4[%c0_5, %c0_6] : memref<128x8xf32, #tpu.memory_space<vmem>>, vector<128x8xf32>
    tpu.vector_store %arg4[%c0_5, %c0_6], %9 {strides = array<i32>} : memref<128x8xf32, #tpu.memory_space<vmem>>, vector<128x8xf32>,
    return
  }
  func.func @transform_0(%arg0: i32) -> (i32, i32) {
    %c0_i32 = arith.constant 0 : i32
    %c0_i32_0 = arith.constant 0 : i32
    return %arg0, %c0_i32 : i32, i32
  }
  func.func @transform_1(%arg0: i32) -> (i32, i32) {
    %c0_i32 = arith.constant 0 : i32
    %c0_i32_0 = arith.constant 0 : i32
    %c0_i32_1 = arith.constant 0 : i32
    return %c0_i32, %c0_i32_0 : i32, i32
  }
  func.func @transform_2(%arg0: i32) -> (i32, i32) {
    %c0_i32 = arith.constant 0 : i32
    %c0_i32_0 = arith.constant 0 : i32
    %c0_i32_1 = arith.constant 0 : i32
    return %c0_i32, %c0_i32_0 : i32, i32
  }
  func.func @transform_3(%arg0: i32) -> (i32, i32) {
    %c0_i32 = arith.constant 0 : i32
    %c0_i32_0 = arith.constant 0 : i32
    return %arg0, %c0_i32 : i32, i32
  }
}

module attributes {stable_mosaic.version = 11 : i64} {
  func.func @_deconv_bn_kernel(%arg0: i32, %arg1: i32, %arg2: memref<1x16x16x4xbf16, #tpu.memory_space<vmem>>, %arg3: memref<3x3x4x4xbf16, #tpu.memory_space<vmem>>, %arg4: memref<1x4xf32, #tpu.memory_space<vmem>>, %arg5: memref<1x4xf32, #tpu.memory_space<vmem>>, %arg6: memref<1x1x8x16x4xbf16, #tpu.memory_space<vmem>>, %arg7: memref<8x4xf32, #tpu.memory_space<vmem>>, %arg8: memref<8x4xf32, #tpu.memory_space<vmem>>, %arg9: memref<10x18x4xf32, #tpu.memory_space<vmem>>) attributes {dimension_semantics = [#tpu.dimension_semantics<parallel>, #tpu.dimension_semantics<arbitrary>], iteration_bounds = array<i64: 2, 2>, scalar_prefetch = 0 : i64, scratch_operands = 1 : i64, tpu.core_type = #tpu.core_type<tc>, window_params = [{transform_indices = @transform_0, window_bounds = array<i64: 1, 16, 16, 4>}, {pipeline_mode = #tpu.pipeline_mode<synchronous>, transform_indices = @transform_1, window_bounds = array<i64: 3, 3, 4, 4>}, {pipeline_mode = #tpu.pipeline_mode<synchronous>, transform_indices = @transform_2, window_bounds = array<i64: 1, 4>}, {pipeline_mode = #tpu.pipeline_mode<synchronous>, transform_indices = @transform_3, window_bounds = array<i64: 1, 4>}, {transform_indices = @transform_4, window_bounds = array<i64: 1, 1, 8, 16, 4>}, {transform_indices = @transform_5, window_bounds = array<i64: 8, 4>}, {transform_indices = @transform_6, window_bounds = array<i64: 8, 4>}]} {
    %c8_i32 = arith.constant 8 : i32
    %0 = arith.muli %arg1, %c8_i32 : i32
    %cst = arith.constant 0.000000e+00 : f32
    %1 = vector.broadcast %cst : f32 to vector<10x18x4xf32>
    %c0 = arith.constant 0 : index
    %c0_0 = arith.constant 0 : index
    %c0_1 = arith.constant 0 : index
    %2 = vector.load %arg9[%c0, %c0_0, %c0_1] : memref<10x18x4xf32, #tpu.memory_space<vmem>>, vector<10x18x4xf32>
    tpu.vector_store %arg9[%c0, %c0_0, %c0_1], %1 {strides = array<i32>} : memref<10x18x4xf32, #tpu.memory_space<vmem>>, vector<10x18x4xf32>,
    %c0_2 = arith.constant 0 : index
    %3 = arith.index_cast %0 : i32 to index
    %c0_3 = arith.constant 0 : index
    %c0_4 = arith.constant 0 : index
    %4 = vector.load %arg2[%c0_2, %3, %c0_3, %c0_4] : memref<1x16x16x4xbf16, #tpu.memory_space<vmem>>, vector<1x8x16x4xbf16>
    %5 = vector.shape_cast %4 : vector<1x8x16x4xbf16> to vector<8x16x4xbf16>
    %6 = arith.extf %5 : vector<8x16x4xbf16> to vector<8x16x4xf32>
    %c0_5 = arith.constant 0 : index
    %c0_6 = arith.constant 0 : index
    %7 = vector.load %arg4[%c0_5, %c0_6] : memref<1x4xf32, #tpu.memory_space<vmem>>, vector<1x4xf32>
    %8 = vector.shape_cast %7 : vector<1x4xf32> to vector<1x1x4xf32>
    %9 = vector.broadcast %8 : vector<1x1x4xf32> to vector<8x16x4xf32>
    %10 = arith.mulf %6, %9 : vector<8x16x4xf32>
    %c0_7 = arith.constant 0 : index
    %c0_8 = arith.constant 0 : index
    %11 = vector.load %arg5[%c0_7, %c0_8] : memref<1x4xf32, #tpu.memory_space<vmem>>, vector<1x4xf32>
    %12 = vector.shape_cast %11 : vector<1x4xf32> to vector<1x1x4xf32>
    %13 = vector.broadcast %12 : vector<1x1x4xf32> to vector<8x16x4xf32>
    %14 = arith.addf %10, %13 : vector<8x16x4xf32>
    %cst_9 = arith.constant 0.000000e+00 : f32
    %15 = vector.broadcast %cst_9 : f32 to vector<8x16x4xf32>
    %16 = arith.maximumf %14, %15 : vector<8x16x4xf32>
    %c1 = arith.constant 1 : index
    %c1_10 = arith.constant 1 : index
    %c0_11 = arith.constant 0 : index
    %17 = vector.load %arg9[%c1, %c1_10, %c0_11] : memref<10x18x4xf32, #tpu.memory_space<vmem>>, vector<8x16x4xf32>
    tpu.vector_store %arg9[%c1, %c1_10, %c0_11], %16 {strides = array<i32>} : memref<10x18x4xf32, #tpu.memory_space<vmem>>, vector<8x16x4xf32>,
    %c0_i32 = arith.constant 0 : i32
    %18 = arith.cmpi sgt, %0, %c0_i32 : i32
    %19 = arith.extui %18 : i1 to i32
    %c0_i32_12 = arith.constant 0 : i32
    %20 = arith.cmpi ne, %19, %c0_i32_12 : i32
    scf.if %20 {
      %c1_i32 = arith.constant 1 : i32
      %118 = arith.subi %0, %c1_i32 : i32
      %c0_104 = arith.constant 0 : index
      %119 = arith.index_cast %118 : i32 to index
      %c0_105 = arith.constant 0 : index
      %c0_106 = arith.constant 0 : index
      %120 = vector.load %arg2[%c0_104, %119, %c0_105, %c0_106] : memref<1x16x16x4xbf16, #tpu.memory_space<vmem>>, vector<1x1x16x4xbf16>
      %121 = vector.shape_cast %120 : vector<1x1x16x4xbf16> to vector<1x16x4xbf16>
      %122 = arith.extf %121 : vector<1x16x4xbf16> to vector<1x16x4xf32>
      %c0_107 = arith.constant 0 : index
      %c0_108 = arith.constant 0 : index
      %123 = vector.load %arg4[%c0_107, %c0_108] : memref<1x4xf32, #tpu.memory_space<vmem>>, vector<1x4xf32>
      %124 = vector.shape_cast %123 : vector<1x4xf32> to vector<1x1x4xf32>
      %125 = vector.broadcast %124 : vector<1x1x4xf32> to vector<1x16x4xf32>
      %126 = arith.mulf %122, %125 : vector<1x16x4xf32>
      %c0_109 = arith.constant 0 : index
      %c0_110 = arith.constant 0 : index
      %127 = vector.load %arg5[%c0_109, %c0_110] : memref<1x4xf32, #tpu.memory_space<vmem>>, vector<1x4xf32>
      %128 = vector.shape_cast %127 : vector<1x4xf32> to vector<1x1x4xf32>
      %129 = vector.broadcast %128 : vector<1x1x4xf32> to vector<1x16x4xf32>
      %130 = arith.addf %126, %129 : vector<1x16x4xf32>
      %cst_111 = arith.constant 0.000000e+00 : f32
      %131 = vector.broadcast %cst_111 : f32 to vector<1x16x4xf32>
      %132 = arith.maximumf %130, %131 : vector<1x16x4xf32>
      %c0_112 = arith.constant 0 : index
      %c1_113 = arith.constant 1 : index
      %c0_114 = arith.constant 0 : index
      %133 = vector.load %arg9[%c0_112, %c1_113, %c0_114] : memref<10x18x4xf32, #tpu.memory_space<vmem>>, vector<1x16x4xf32>
      tpu.vector_store %arg9[%c0_112, %c1_113, %c0_114], %132 {strides = array<i32>} : memref<10x18x4xf32, #tpu.memory_space<vmem>>, vector<1x16x4xf32>,
    } else {
    }
    %c8_i32_13 = arith.constant 8 : i32
    %21 = arith.addi %0, %c8_i32_13 : i32
    %c16_i32 = arith.constant 16 : i32
    %22 = arith.cmpi slt, %21, %c16_i32 : i32
    %23 = arith.extui %22 : i1 to i32
    %c0_i32_14 = arith.constant 0 : i32
    %24 = arith.cmpi ne, %23, %c0_i32_14 : i32
    scf.if %24 {
      %c8_i32_104 = arith.constant 8 : i32
      %118 = arith.addi %0, %c8_i32_104 : i32
      %c0_105 = arith.constant 0 : index
      %119 = arith.index_cast %118 : i32 to index
      %c0_106 = arith.constant 0 : index
      %c0_107 = arith.constant 0 : index
      %120 = vector.load %arg2[%c0_105, %119, %c0_106, %c0_107] : memref<1x16x16x4xbf16, #tpu.memory_space<vmem>>, vector<1x1x16x4xbf16>
      %121 = vector.shape_cast %120 : vector<1x1x16x4xbf16> to vector<1x16x4xbf16>
      %122 = arith.extf %121 : vector<1x16x4xbf16> to vector<1x16x4xf32>
      %c0_108 = arith.constant 0 : index
      %c0_109 = arith.constant 0 : index
      %123 = vector.load %arg4[%c0_108, %c0_109] : memref<1x4xf32, #tpu.memory_space<vmem>>, vector<1x4xf32>
      %124 = vector.shape_cast %123 : vector<1x4xf32> to vector<1x1x4xf32>
      %125 = vector.broadcast %124 : vector<1x1x4xf32> to vector<1x16x4xf32>
      %126 = arith.mulf %122, %125 : vector<1x16x4xf32>
      %c0_110 = arith.constant 0 : index
      %c0_111 = arith.constant 0 : index
      %127 = vector.load %arg5[%c0_110, %c0_111] : memref<1x4xf32, #tpu.memory_space<vmem>>, vector<1x4xf32>
      %128 = vector.shape_cast %127 : vector<1x4xf32> to vector<1x1x4xf32>
      %129 = vector.broadcast %128 : vector<1x1x4xf32> to vector<1x16x4xf32>
      %130 = arith.addf %126, %129 : vector<1x16x4xf32>
      %cst_112 = arith.constant 0.000000e+00 : f32
      %131 = vector.broadcast %cst_112 : f32 to vector<1x16x4xf32>
      %132 = arith.maximumf %130, %131 : vector<1x16x4xf32>
      %c9 = arith.constant 9 : index
      %c1_113 = arith.constant 1 : index
      %c0_114 = arith.constant 0 : index
      %133 = vector.load %arg9[%c9, %c1_113, %c0_114] : memref<10x18x4xf32, #tpu.memory_space<vmem>>, vector<1x16x4xf32>
      tpu.vector_store %arg9[%c9, %c1_113, %c0_114], %132 {strides = array<i32>} : memref<10x18x4xf32, #tpu.memory_space<vmem>>, vector<1x16x4xf32>,
    } else {
    }
    %cst_15 = arith.constant 0.000000e+00 : f32
    %25 = vector.broadcast %cst_15 : f32 to vector<1x4xf32>
    %cst_16 = arith.constant 0.000000e+00 : f32
    %26 = vector.broadcast %cst_16 : f32 to vector<1x4xf32>
    %cst_17 = arith.constant 0.000000e+00 : f32
    %27 = vector.broadcast %cst_17 : f32 to vector<128x4xf32>
    %c2 = arith.constant 2 : index
    %c2_18 = arith.constant 2 : index
    %c0_19 = arith.constant 0 : index
    %28 = vector.load %arg9[%c2, %c2_18, %c0_19] : memref<10x18x4xf32, #tpu.memory_space<vmem>>, vector<8x16x4xf32>
    %29 = vector.shape_cast %28 : vector<8x16x4xf32> to vector<128x4xf32>
    %30 = arith.truncf %29 : vector<128x4xf32> to vector<128x4xbf16>
    %c0_20 = arith.constant 0 : index
    %c0_21 = arith.constant 0 : index
    %c0_22 = arith.constant 0 : index
    %c0_23 = arith.constant 0 : index
    %31 = vector.load %arg3[%c0_20, %c0_21, %c0_22, %c0_23] : memref<3x3x4x4xbf16, #tpu.memory_space<vmem>>, vector<1x1x4x4xbf16>
    %32 = vector.shape_cast %31 : vector<1x1x4x4xbf16> to vector<4x4xbf16>
    %cst_24 = arith.constant dense<0.000000e+00> : vector<128x4xf32>
    %33 = tpu.matmul %30, %32, %cst_24 {dimension_numbers = #tpu.dot_dimension_numbers<[1], [0], [0], [1], [0, 0, 1, 1], [], []>} : vector<128x4xbf16>, vector<4x4xbf16>, vector<128x4xf32> -> vector<128x4xf32>
    %34 = arith.addf %27, %33 : vector<128x4xf32>
    %c2_25 = arith.constant 2 : index
    %c1_26 = arith.constant 1 : index
    %c0_27 = arith.constant 0 : index
    %35 = vector.load %arg9[%c2_25, %c1_26, %c0_27] : memref<10x18x4xf32, #tpu.memory_space<vmem>>, vector<8x16x4xf32>
    %36 = vector.shape_cast %35 : vector<8x16x4xf32> to vector<128x4xf32>
    %37 = arith.truncf %36 : vector<128x4xf32> to vector<128x4xbf16>
    %c0_28 = arith.constant 0 : index
    %c1_29 = arith.constant 1 : index
    %c0_30 = arith.constant 0 : index
    %c0_31 = arith.constant 0 : index
    %38 = vector.load %arg3[%c0_28, %c1_29, %c0_30, %c0_31] : memref<3x3x4x4xbf16, #tpu.memory_space<vmem>>, vector<1x1x4x4xbf16>
    %39 = vector.shape_cast %38 : vector<1x1x4x4xbf16> to vector<4x4xbf16>
    %cst_32 = arith.constant dense<0.000000e+00> : vector<128x4xf32>
    %40 = tpu.matmul %37, %39, %cst_32 {dimension_numbers = #tpu.dot_dimension_numbers<[1], [0], [0], [1], [0, 0, 1, 1], [], []>} : vector<128x4xbf16>, vector<4x4xbf16>, vector<128x4xf32> -> vector<128x4xf32>
    %41 = arith.addf %34, %40 : vector<128x4xf32>
    %c2_33 = arith.constant 2 : index
    %c0_34 = arith.constant 0 : index
    %c0_35 = arith.constant 0 : index
    %42 = vector.load %arg9[%c2_33, %c0_34, %c0_35] : memref<10x18x4xf32, #tpu.memory_space<vmem>>, vector<8x16x4xf32>
    %43 = vector.shape_cast %42 : vector<8x16x4xf32> to vector<128x4xf32>
    %44 = arith.truncf %43 : vector<128x4xf32> to vector<128x4xbf16>
    %c0_36 = arith.constant 0 : index
    %c2_37 = arith.constant 2 : index
    %c0_38 = arith.constant 0 : index
    %c0_39 = arith.constant 0 : index
    %45 = vector.load %arg3[%c0_36, %c2_37, %c0_38, %c0_39] : memref<3x3x4x4xbf16, #tpu.memory_space<vmem>>, vector<1x1x4x4xbf16>
    %46 = vector.shape_cast %45 : vector<1x1x4x4xbf16> to vector<4x4xbf16>
    %cst_40 = arith.constant dense<0.000000e+00> : vector<128x4xf32>
    %47 = tpu.matmul %44, %46, %cst_40 {dimension_numbers = #tpu.dot_dimension_numbers<[1], [0], [0], [1], [0, 0, 1, 1], [], []>} : vector<128x4xbf16>, vector<4x4xbf16>, vector<128x4xf32> -> vector<128x4xf32>
    %48 = arith.addf %41, %47 : vector<128x4xf32>
    %c1_41 = arith.constant 1 : index
    %c2_42 = arith.constant 2 : index
    %c0_43 = arith.constant 0 : index
    %49 = vector.load %arg9[%c1_41, %c2_42, %c0_43] : memref<10x18x4xf32, #tpu.memory_space<vmem>>, vector<8x16x4xf32>
    %50 = vector.shape_cast %49 : vector<8x16x4xf32> to vector<128x4xf32>
    %51 = arith.truncf %50 : vector<128x4xf32> to vector<128x4xbf16>
    %c1_44 = arith.constant 1 : index
    %c0_45 = arith.constant 0 : index
    %c0_46 = arith.constant 0 : index
    %c0_47 = arith.constant 0 : index
    %52 = vector.load %arg3[%c1_44, %c0_45, %c0_46, %c0_47] : memref<3x3x4x4xbf16, #tpu.memory_space<vmem>>, vector<1x1x4x4xbf16>
    %53 = vector.shape_cast %52 : vector<1x1x4x4xbf16> to vector<4x4xbf16>
    %cst_48 = arith.constant dense<0.000000e+00> : vector<128x4xf32>
    %54 = tpu.matmul %51, %53, %cst_48 {dimension_numbers = #tpu.dot_dimension_numbers<[1], [0], [0], [1], [0, 0, 1, 1], [], []>} : vector<128x4xbf16>, vector<4x4xbf16>, vector<128x4xf32> -> vector<128x4xf32>
    %55 = arith.addf %48, %54 : vector<128x4xf32>
    %c1_49 = arith.constant 1 : index
    %c1_50 = arith.constant 1 : index
    %c0_51 = arith.constant 0 : index
    %56 = vector.load %arg9[%c1_49, %c1_50, %c0_51] : memref<10x18x4xf32, #tpu.memory_space<vmem>>, vector<8x16x4xf32>
    %57 = vector.shape_cast %56 : vector<8x16x4xf32> to vector<128x4xf32>
    %58 = arith.truncf %57 : vector<128x4xf32> to vector<128x4xbf16>
    %c1_52 = arith.constant 1 : index
    %c1_53 = arith.constant 1 : index
    %c0_54 = arith.constant 0 : index
    %c0_55 = arith.constant 0 : index
    %59 = vector.load %arg3[%c1_52, %c1_53, %c0_54, %c0_55] : memref<3x3x4x4xbf16, #tpu.memory_space<vmem>>, vector<1x1x4x4xbf16>
    %60 = vector.shape_cast %59 : vector<1x1x4x4xbf16> to vector<4x4xbf16>
    %cst_56 = arith.constant dense<0.000000e+00> : vector<128x4xf32>
    %61 = tpu.matmul %58, %60, %cst_56 {dimension_numbers = #tpu.dot_dimension_numbers<[1], [0], [0], [1], [0, 0, 1, 1], [], []>} : vector<128x4xbf16>, vector<4x4xbf16>, vector<128x4xf32> -> vector<128x4xf32>
    %62 = arith.addf %55, %61 : vector<128x4xf32>
    %c1_57 = arith.constant 1 : index
    %c0_58 = arith.constant 0 : index
    %c0_59 = arith.constant 0 : index
    %63 = vector.load %arg9[%c1_57, %c0_58, %c0_59] : memref<10x18x4xf32, #tpu.memory_space<vmem>>, vector<8x16x4xf32>
    %64 = vector.shape_cast %63 : vector<8x16x4xf32> to vector<128x4xf32>
    %65 = arith.truncf %64 : vector<128x4xf32> to vector<128x4xbf16>
    %c1_60 = arith.constant 1 : index
    %c2_61 = arith.constant 2 : index
    %c0_62 = arith.constant 0 : index
    %c0_63 = arith.constant 0 : index
    %66 = vector.load %arg3[%c1_60, %c2_61, %c0_62, %c0_63] : memref<3x3x4x4xbf16, #tpu.memory_space<vmem>>, vector<1x1x4x4xbf16>
    %67 = vector.shape_cast %66 : vector<1x1x4x4xbf16> to vector<4x4xbf16>
    %cst_64 = arith.constant dense<0.000000e+00> : vector<128x4xf32>
    %68 = tpu.matmul %65, %67, %cst_64 {dimension_numbers = #tpu.dot_dimension_numbers<[1], [0], [0], [1], [0, 0, 1, 1], [], []>} : vector<128x4xbf16>, vector<4x4xbf16>, vector<128x4xf32> -> vector<128x4xf32>
    %69 = arith.addf %62, %68 : vector<128x4xf32>
    %c0_65 = arith.constant 0 : index
    %c2_66 = arith.constant 2 : index
    %c0_67 = arith.constant 0 : index
    %70 = vector.load %arg9[%c0_65, %c2_66, %c0_67] : memref<10x18x4xf32, #tpu.memory_space<vmem>>, vector<8x16x4xf32>
    %71 = vector.shape_cast %70 : vector<8x16x4xf32> to vector<128x4xf32>
    %72 = arith.truncf %71 : vector<128x4xf32> to vector<128x4xbf16>
    %c2_68 = arith.constant 2 : index
    %c0_69 = arith.constant 0 : index
    %c0_70 = arith.constant 0 : index
    %c0_71 = arith.constant 0 : index
    %73 = vector.load %arg3[%c2_68, %c0_69, %c0_70, %c0_71] : memref<3x3x4x4xbf16, #tpu.memory_space<vmem>>, vector<1x1x4x4xbf16>
    %74 = vector.shape_cast %73 : vector<1x1x4x4xbf16> to vector<4x4xbf16>
    %cst_72 = arith.constant dense<0.000000e+00> : vector<128x4xf32>
    %75 = tpu.matmul %72, %74, %cst_72 {dimension_numbers = #tpu.dot_dimension_numbers<[1], [0], [0], [1], [0, 0, 1, 1], [], []>} : vector<128x4xbf16>, vector<4x4xbf16>, vector<128x4xf32> -> vector<128x4xf32>
    %76 = arith.addf %69, %75 : vector<128x4xf32>
    %c0_73 = arith.constant 0 : index
    %c1_74 = arith.constant 1 : index
    %c0_75 = arith.constant 0 : index
    %77 = vector.load %arg9[%c0_73, %c1_74, %c0_75] : memref<10x18x4xf32, #tpu.memory_space<vmem>>, vector<8x16x4xf32>
    %78 = vector.shape_cast %77 : vector<8x16x4xf32> to vector<128x4xf32>
    %79 = arith.truncf %78 : vector<128x4xf32> to vector<128x4xbf16>
    %c2_76 = arith.constant 2 : index
    %c1_77 = arith.constant 1 : index
    %c0_78 = arith.constant 0 : index
    %c0_79 = arith.constant 0 : index
    %80 = vector.load %arg3[%c2_76, %c1_77, %c0_78, %c0_79] : memref<3x3x4x4xbf16, #tpu.memory_space<vmem>>, vector<1x1x4x4xbf16>
    %81 = vector.shape_cast %80 : vector<1x1x4x4xbf16> to vector<4x4xbf16>
    %cst_80 = arith.constant dense<0.000000e+00> : vector<128x4xf32>
    %82 = tpu.matmul %79, %81, %cst_80 {dimension_numbers = #tpu.dot_dimension_numbers<[1], [0], [0], [1], [0, 0, 1, 1], [], []>} : vector<128x4xbf16>, vector<4x4xbf16>, vector<128x4xf32> -> vector<128x4xf32>
    %83 = arith.addf %76, %82 : vector<128x4xf32>
    %c0_81 = arith.constant 0 : index
    %c0_82 = arith.constant 0 : index
    %c0_83 = arith.constant 0 : index
    %84 = vector.load %arg9[%c0_81, %c0_82, %c0_83] : memref<10x18x4xf32, #tpu.memory_space<vmem>>, vector<8x16x4xf32>
    %85 = vector.shape_cast %84 : vector<8x16x4xf32> to vector<128x4xf32>
    %86 = arith.truncf %85 : vector<128x4xf32> to vector<128x4xbf16>
    %c2_84 = arith.constant 2 : index
    %c2_85 = arith.constant 2 : index
    %c0_86 = arith.constant 0 : index
    %c0_87 = arith.constant 0 : index
    %87 = vector.load %arg3[%c2_84, %c2_85, %c0_86, %c0_87] : memref<3x3x4x4xbf16, #tpu.memory_space<vmem>>, vector<1x1x4x4xbf16>
    %88 = vector.shape_cast %87 : vector<1x1x4x4xbf16> to vector<4x4xbf16>
    %cst_88 = arith.constant dense<0.000000e+00> : vector<128x4xf32>
    %89 = tpu.matmul %86, %88, %cst_88 {dimension_numbers = #tpu.dot_dimension_numbers<[1], [0], [0], [1], [0, 0, 1, 1], [], []>} : vector<128x4xbf16>, vector<4x4xbf16>, vector<128x4xf32> -> vector<128x4xf32>
    %90 = arith.addf %83, %89 : vector<128x4xf32>
    %91 = arith.truncf %90 : vector<128x4xf32> to vector<128x4xbf16>
    %92 = arith.extf %91 : vector<128x4xbf16> to vector<128x4xf32>
    %cst_89 = arith.constant dense<0.000000e+00> : vector<4xf32>
    %93 = vector.multi_reduction <add>, %92, %cst_89 [0] : vector<128x4xf32> to vector<4xf32>
    %94 = vector.shape_cast %93 : vector<4xf32> to vector<1x4xf32>
    %95 = arith.addf %25, %94 : vector<1x4xf32>
    %96 = arith.mulf %92, %92 : vector<128x4xf32>
    %cst_90 = arith.constant dense<0.000000e+00> : vector<4xf32>
    %97 = vector.multi_reduction <add>, %96, %cst_90 [0] : vector<128x4xf32> to vector<4xf32>
    %98 = vector.shape_cast %97 : vector<4xf32> to vector<1x4xf32>
    %99 = arith.addf %26, %98 : vector<1x4xf32>
    %100 = vector.shape_cast %91 : vector<128x4xbf16> to vector<1x128x4xbf16>
    %101 = vector.shape_cast %100 : vector<1x128x4xbf16> to vector<1x1x8x16x4xbf16>
    %c0_91 = arith.constant 0 : index
    %c0_92 = arith.constant 0 : index
    %c0_93 = arith.constant 0 : index
    %c0_94 = arith.constant 0 : index
    %c0_95 = arith.constant 0 : index
    %102 = vector.load %arg6[%c0_91, %c0_92, %c0_93, %c0_94, %c0_95] : memref<1x1x8x16x4xbf16, #tpu.memory_space<vmem>>, vector<1x1x8x16x4xbf16>
    tpu.vector_store %arg6[%c0_91, %c0_92, %c0_93, %c0_94, %c0_95], %101 {strides = array<i32>} : memref<1x1x8x16x4xbf16, #tpu.memory_space<vmem>>, vector<1x1x8x16x4xbf16>,
    %103 = tpu.iota {dimensions = array<i32: 0>} : vector<8x4xi32>
    %c0_i32_96 = arith.constant 0 : i32
    %104 = vector.broadcast %c0_i32_96 : i32 to vector<8x4xi32>
    %105 = arith.cmpi eq, %103, %104 : vector<8x4xi32>
    %cst_97 = arith.constant 0.000000e+00 : f32
    %106 = vector.shape_cast %95 : vector<1x4xf32> to vector<1x4xf32>
    %107 = vector.broadcast %106 : vector<1x4xf32> to vector<8x4xf32>
    %108 = vector.broadcast %cst_97 : f32 to vector<8x4xf32>
    %109 = arith.select %105, %107, %108 : vector<8x4xi1>, vector<8x4xf32>
    %c0_98 = arith.constant 0 : index
    %c0_99 = arith.constant 0 : index
    %110 = vector.load %arg7[%c0_98, %c0_99] : memref<8x4xf32, #tpu.memory_space<vmem>>, vector<8x4xf32>
    tpu.vector_store %arg7[%c0_98, %c0_99], %109 {strides = array<i32>} : memref<8x4xf32, #tpu.memory_space<vmem>>, vector<8x4xf32>,
    %c0_i32_100 = arith.constant 0 : i32
    %111 = vector.broadcast %c0_i32_100 : i32 to vector<8x4xi32>
    %112 = arith.cmpi eq, %103, %111 : vector<8x4xi32>
    %cst_101 = arith.constant 0.000000e+00 : f32
    %113 = vector.shape_cast %99 : vector<1x4xf32> to vector<1x4xf32>
    %114 = vector.broadcast %113 : vector<1x4xf32> to vector<8x4xf32>
    %115 = vector.broadcast %cst_101 : f32 to vector<8x4xf32>
    %116 = arith.select %112, %114, %115 : vector<8x4xi1>, vector<8x4xf32>
    %c0_102 = arith.constant 0 : index
    %c0_103 = arith.constant 0 : index
    %117 = vector.load %arg8[%c0_102, %c0_103] : memref<8x4xf32, #tpu.memory_space<vmem>>, vector<8x4xf32>
    tpu.vector_store %arg8[%c0_102, %c0_103], %116 {strides = array<i32>} : memref<8x4xf32, #tpu.memory_space<vmem>>, vector<8x4xf32>,
    return
  }
  func.func @transform_0(%arg0: i32, %arg1: i32) -> (i32, i32, i32, i32) {
    %c0_i32 = arith.constant 0 : i32
    %c0_i32_0 = arith.constant 0 : i32
    %c0_i32_1 = arith.constant 0 : i32
    %c0_i32_2 = arith.constant 0 : i32
    return %arg0, %c0_i32, %c0_i32_0, %c0_i32_1 : i32, i32, i32, i32
  }
  func.func @transform_1(%arg0: i32, %arg1: i32) -> (i32, i32, i32, i32) {
    %c0_i32 = arith.constant 0 : i32
    %c0_i32_0 = arith.constant 0 : i32
    %c0_i32_1 = arith.constant 0 : i32
    %c0_i32_2 = arith.constant 0 : i32
    %c0_i32_3 = arith.constant 0 : i32
    return %c0_i32, %c0_i32_0, %c0_i32_1, %c0_i32_2 : i32, i32, i32, i32
  }
  func.func @transform_2(%arg0: i32, %arg1: i32) -> (i32, i32) {
    %c0_i32 = arith.constant 0 : i32
    %c0_i32_0 = arith.constant 0 : i32
    %c0_i32_1 = arith.constant 0 : i32
    return %c0_i32, %c0_i32_0 : i32, i32
  }
  func.func @transform_3(%arg0: i32, %arg1: i32) -> (i32, i32) {
    %c0_i32 = arith.constant 0 : i32
    %c0_i32_0 = arith.constant 0 : i32
    %c0_i32_1 = arith.constant 0 : i32
    return %c0_i32, %c0_i32_0 : i32, i32
  }
  func.func @transform_4(%arg0: i32, %arg1: i32) -> (i32, i32, i32, i32, i32) {
    %c0_i32 = arith.constant 0 : i32
    %c0_i32_0 = arith.constant 0 : i32
    %c0_i32_1 = arith.constant 0 : i32
    %c0_i32_2 = arith.constant 0 : i32
    return %arg0, %c0_i32, %arg1, %c0_i32_0, %c0_i32_1 : i32, i32, i32, i32, i32
  }
  func.func @transform_5(%arg0: i32, %arg1: i32) -> (i32, i32) {
    %c2_i32 = arith.constant 2 : i32
    %0 = arith.muli %arg0, %c2_i32 : i32
    %1 = arith.addi %0, %arg1 : i32
    %c0_i32 = arith.constant 0 : i32
    %c0_i32_0 = arith.constant 0 : i32
    return %1, %c0_i32 : i32, i32
  }
  func.func @transform_6(%arg0: i32, %arg1: i32) -> (i32, i32) {
    %c2_i32 = arith.constant 2 : i32
    %0 = arith.muli %arg0, %c2_i32 : i32
    %1 = arith.addi %0, %arg1 : i32
    %c0_i32 = arith.constant 0 : i32
    %c0_i32_0 = arith.constant 0 : i32
    return %1, %c0_i32 : i32, i32
  }
}

</mosaic_0001>

<bundles_post_ra>
// kernel: decoder_block_forward.4
= control target key start
LH: loop header
LB: loop body
LE: loop exit
PB: predicated region body
PF: predicated region fallthrough
CT: control target
= control target key end

     0   :  { %s815_s15 = smov 0   ;;  %s940_s0 = inlined_call_operand.vmem [shape: f32[512,16], index: 0, kind: input, shape index: {}]   ;;  %s941_s1 = inlined_call_operand.vmem [shape: bf16[16,4], index: 1, kind: input, shape index: {}]   ;;  %s942_s2 = inlined_call_operand.vmem [shape: bf16[512,4], index: 2, kind: output, shape index: {0}]   ;;  %s943_s3 = inlined_call_operand.vmem [shape: f32[32,4], index: 3, kind: output, shape index: {1}]   ;;  %s944_s4 = inlined_call_operand.vmem [shape: f32[32,4], index: 4, kind: output, shape index: {2}]  }
   0x1 LB: > { %s821_s16 = sadd.s32 4294967295, %s788_s15   ;;  %p694_p0 = scmp.ge.s32.totalorder %s788_s15, 1  ;;  %s788_s15 = sphi %s815_s15, %s15_s15  }
   0x2   : > { %p168_p1 = scmp.lt.s32.totalorder %s788_s15, 5 }
   0x4   : > { %p169_p2 = pnand %p694_p0, %p168_p1 }
   0x5   : > { %v781_v0 = vld [vmem:[%s941_s1] sm:$0xff] (!%p169_p2)   ;;  %s695_s19 = sshll.u32 (!%p169_p2), %s821_s16, 4  ;;  %vm255_vm0 = vcmask (!%p169_p2), 130048   ;;  %vm441_vm1 = vcmask (!%p169_p2), 27648   ;;  %vm474_vm2 = vcmask (!%p169_p2), 31744   ;;  %p214_p4 = scmp.lt.s32.totalorder (!%p169_p2), %s821_s16, 3 }
   0x6   : > { %172 = sbr.rel (%p169_p2) target bundleno = 288 (0x120), region = 28  ;;  %p203_p3 = scmp.lt.s32.totalorder (!%p169_p2), %s695_s19, 63  ;;  %753 = vmatprep.subr.bf16.mxu0 (!%p169_p2), %v781_v0  ;;  %771 = vmatprep.subr.bf16.mxu1 (!%p169_p2), %v781_v0 }
   0x7   : > { %754 = vmatpush3.bf16.msra.mxu0 (!%p169_p2), %v781_v0  ;;  %772 = vmatpush3.bf16.msra.mxu1 (!%p169_p2), %v781_v0 }
   0xd   : > { %s946_s19 = smov (!%p203_p3, %s695_s19), 63  ;;  %s948_s16 = smov (!%p214_p4, %s821_s16), 3 }
   0xe   : > { %s696_s20 = sshll.u32 %s946_s19, 3  ;;  %s698_s24 = sshll.u32 %s946_s19, 2 }
   0xf   : > { %s206_s23 = scalar_lea.vmem %s940_s0, %s696_s20  ;;  %s847_s27 = scalar_lea.vmem %s942_s2, %s698_s24 }
  0x10   : > { %v223_v1 = vld [vmem:[%s206_s23] sm:$0xff]  ;;  %v224_v2 = vld [vmem:[%s206_s23 + $0x8] sm:$0xff]  ;;  %v225_v3 = vld [vmem:[%s206_s23 + $0x10] sm:$0xff]  ;;  %s699_s28 = sshll.u32 %s948_s16, 3 }
  0x11   : > { %v239_v4 = vpack.c.bf16 %v224_v2, %v223_v1  ;;  %v226_v5 = vld [vmem:[%s206_s23 + $0x18] sm:$0xff]  ;;  %v227_v6 = vld [vmem:[%s206_s23 + $0x20] sm:$0xff]  ;;  %v228_v7 = vld [vmem:[%s206_s23 + $0x28] sm:$0xff]  ;;  %s217_s5 = scalar_lea.vmem %s943_s3, %s699_s28  ;;  %s221_s8 = scalar_lea.vmem %s944_s4, %s699_s28 }
  0x12   : > { %v240_v8 = vpack.c.bf16 %v226_v5, %v225_v3  ;;  %v241_v9 = vpack.c.bf16 %v228_v7, %v227_v6  ;;  %v231_v10 = vld [vmem:[%s206_s23 + $0x40] sm:$0xff]  ;;  %v232_v11 = vld [vmem:[%s206_s23 + $0x48] sm:$0xff]  ;;  %v233_v12 = vld [vmem:[%s206_s23 + $0x50] sm:$0xff] }
  0x13   : > { %755 = vmatprep.mubr.msk.bf16.mxu0 %vm255_vm0, %v239_v4  ;;  %v234_v13 = vld [vmem:[%s206_s23 + $0x58] sm:$0xff]  ;;  %v243_v14 = vpack.c.bf16 %v232_v11, %v231_v10  ;;  %v235_v16 = vld [vmem:[%s206_s23 + $0x60] sm:$0xff]  ;;  %v236_v17 = vld [vmem:[%s206_s23 + $0x68] sm:$0xff] }
  0x14   : > { %756 = vmatmul.mubr.msk.bf16.vlgmr.msra.gmra.mrb[0].mxu0 %vm255_vm0, %v240_v8  ;;  %v244_v15 = vpack.c.bf16 %v234_v13, %v233_v12  ;;  %v229_v18 = vld [vmem:[%s206_s23 + $0x30] sm:$0xff]  ;;  %v230_v19 = vld [vmem:[%s206_s23 + $0x38] sm:$0xff]  ;;  %v245_v20 = vpack.c.bf16 %v236_v17, %v235_v16 }
  0x15   : > { %759 = vmatprep.mubr.msk.bf16.mxu0 %vm255_vm0, %v241_v9  ;;  %763 = vmatprep.mubr.msk.bf16.mxu1 %vm255_vm0, %v243_v14  ;;  %v242_v21 = vpack.c.bf16 %v230_v19, %v229_v18  ;;  %v237_v22 = vld [vmem:[%s206_s23 + $0x70] sm:$0xff]  ;;  %v238_v23 = vld [vmem:[%s206_s23 + $0x78] sm:$0xff] }
  0x16   : > { %764 = vmatmul.mubr.msk.bf16.vlgmr.msra.gmra.mrb[0].mxu1 %vm255_vm0, %v244_v15  ;;  %v246_v24 = vpack.c.bf16 %v238_v23, %v237_v22 }
  0x17   : > { %767 = vmatprep.mubr.msk.bf16.mxu1 %vm255_vm0, %v245_v20 }
  0x1c   : > { %760 = vmatmul.mubr.msk.bf16.gmra.mrb[4].mxu0 %vm255_vm0, %v242_v21 }
  0x1e   : > { %768 = vmatmul.mubr.msk.bf16.gmra.mrb[4].mxu1 %vm255_vm0, %v246_v24 }
  0xe7   : > { %v757_v25 = vpop.f32.mrb[0].mxu0 }
  0xe8   : > { %v730_v26 = vpack.c.bf16 %v757_v25, %v757_v25  ;;  %v314_v27 = vpop.f32.mrb[1].mxu0 }
  0xe9   : > { %v728_v28 = vpack.c.bf16 %v314_v27, %v314_v27  ;;  %v758_v29 = vpop.f32.mrb[2].mxu0  ;;  %v765_v33 = vpop.f32.mrb[0].mxu1 }
  0xea   : > { %444 = vst.msk [vmem:[%s847_s27 + $0x8] sm:$0xf] %vm441_vm1, %v730_v26  ;;  %v378_v30 = vpack.c.bf16 %v758_v29, %v757_v25  ;;  %v731_v31 = vpack.c.bf16 %v758_v29, %v758_v29  ;;  %v317_v32 = vpop.f32.mrb[3].mxu0  ;;  %v738_v36 = vpack.c.bf16 %v765_v33, %v765_v33  ;;  %v853_v37 = vpop.f32.mrb[1].mxu1 }
  0xeb   : > { %442 = vst.msk [vmem:[%s847_s27] sm:$0xf] %vm441_vm1, %v728_v28  ;;  %v377_v34 = vpack.c.bf16 %v317_v32, %v314_v27  ;;  %v729_v35 = vpack.c.bf16 %v317_v32, %v317_v32  ;;  %v736_v40 = vpack.c.bf16 %v853_v37, %v853_v37  ;;  %v766_v41 = vpop.f32.mrb[2].mxu1 }
  0xec   : > { %445 = vst.msk [vmem:[%s847_s27 + $0xc] sm:$0xf] %vm441_vm1, %v731_v31  ;;  %v460_v38 = vunpack.c.l.bf16 %v378_v30  ;;  %v461_v39 = vunpack.c.h.bf16 %v378_v30  ;;  %452 = vst.msk [vmem:[%s847_s27 + $0x28] sm:$0xf] %vm441_vm1, %v738_v36  ;;  %v863_v44 = vpack.c.bf16 %v766_v41, %v765_v33  ;;  %v739_v45 = vpack.c.bf16 %v766_v41, %v766_v41  ;;  %v865_v46 = vpop.f32.mrb[3].mxu1 }
  0xed   : > { %443 = vst.msk [vmem:[%s847_s27 + $0x4] sm:$0xf] %vm441_vm1, %v729_v35  ;;  %v458_v42 = vunpack.c.l.bf16 %v377_v34  ;;  %v459_v43 = vunpack.c.h.bf16 %v377_v34  ;;  %450 = vst.msk [vmem:[%s847_s27 + $0x20] sm:$0xf] %vm441_vm1, %v736_v40  ;;  %v381_v31 = vpack.c.bf16 %v865_v46, %v853_v37  ;;  %v737_v32 = vpack.c.bf16 %v865_v46, %v865_v46 }
  0xee   : > { %v514_v47 = vmul.f32 %v460_v38, %v460_v38  ;;  %453 = vst.msk [vmem:[%s847_s27 + $0x2c] sm:$0xf] %vm441_vm1, %v739_v45  ;;  %v478_v53 = vsel %vm474_vm2, %v460_v38, 0.0  ;;  %v480_v57 = vsel %vm474_vm2, %v461_v39, 0.0  ;;  %v515_v4 = vmul.f32 %v461_v39, %v461_v39 }
  0xef   : > { %v475_v48 = vsel %vm474_vm2, %v458_v42, 0.0  ;;  %v476_v49 = vsel %vm474_vm2, %v459_v43, 0.0  ;;  %v512_v50 = vmul.f32 %v458_v42, %v458_v42  ;;  %v513_v51 = vmul.f32 %v459_v43, %v459_v43  ;;  %v761_v52 = vpop.f32.mrb[4].mxu0  ;;  %451 = vst.msk [vmem:[%s847_s27 + $0x24] sm:$0xf] %vm441_vm1, %v737_v32 }
  0xf0   : > { %v477_v54 = vadd.f32 %v476_v49, %v475_v48  ;;  %v734_v55 = vpack.c.bf16 %v761_v52, %v761_v52  ;;  %v330_v56 = vpop.f32.mrb[5].mxu0  ;;  %v531_v5 = vsel %vm474_vm2, %v514_v47, 0.0  ;;  %v533_v17 = vsel %vm474_vm2, %v515_v4, 0.0 }
  0xf1   : > { %v528_v58 = vsel %vm474_vm2, %v512_v50, 0.0  ;;  %v529_v59 = vsel %vm474_vm2, %v513_v51, 0.0  ;;  %v732_v60 = vpack.c.bf16 %v330_v56, %v330_v56  ;;  %v762_v61 = vpop.f32.mrb[6].mxu0  ;;  %v769_v3 = vpop.f32.mrb[4].mxu1  ;;  %v468_v24 = vunpack.c.l.bf16 %v863_v44 }
  0xf2   : > { %v479_v62 = vadd.f32 %v478_v53, %v477_v54  ;;  %v530_v63 = vadd.f32 %v529_v59, %v528_v58  ;;  %448 = vst.msk [vmem:[%s847_s27 + $0x18] sm:$0xf] %vm441_vm1, %v734_v55  ;;  %v380_v0 = vpack.c.bf16 %v762_v61, %v761_v52  ;;  %v735_v1 = vpack.c.bf16 %v762_v61, %v762_v61  ;;  %v333_v2 = vpop.f32.mrb[7].mxu0  ;;  %v362_v8 = vpop.f32.mrb[5].mxu1 }
  0xf3   : > { %446 = vst.msk [vmem:[%s847_s27 + $0x10] sm:$0xf] %vm441_vm1, %v732_v60  ;;  %v379_v6 = vpack.c.bf16 %v333_v2, %v330_v56  ;;  %v733_v7 = vpack.c.bf16 %v333_v2, %v333_v2  ;;  %v770_v12 = vpop.f32.mrb[6].mxu1  ;;  %v742_v34 = vpack.c.bf16 %v769_v3, %v769_v3  ;;  %v740_v35 = vpack.c.bf16 %v362_v8, %v362_v8 }
  0xf4   : > { %v532_v9 = vadd.f32 %v531_v5, %v530_v63  ;;  %449 = vst.msk [vmem:[%s847_s27 + $0x1c] sm:$0xf] %vm441_vm1, %v735_v1  ;;  %v464_v10 = vunpack.c.l.bf16 %v380_v0  ;;  %v481_v11 = vadd.f32 %v480_v57, %v479_v62  ;;  %v465_v13 = vunpack.c.h.bf16 %v380_v0  ;;  %v365_v16 = vpop.f32.mrb[7].mxu1 }
  0xf5   : > { %447 = vst.msk [vmem:[%s847_s27 + $0x14] sm:$0xf] %vm441_vm1, %v733_v7  ;;  %v462_v14 = vunpack.c.l.bf16 %v379_v6  ;;  %v463_v15 = vunpack.c.h.bf16 %v379_v6  ;;  %v384_v36 = vpack.c.bf16 %v770_v12, %v769_v3  ;;  %v466_v40 = vunpack.c.l.bf16 %v381_v31  ;;  %456 = vst.msk [vmem:[%s847_s27 + $0x38] sm:$0xf] %vm441_vm1, %v742_v34 }
  0xf6   : > { %v486_v21 = vsel %vm474_vm2, %v464_v10, 0.0  ;;  %v534_v23 = vadd.f32 %v533_v17, %v532_v9  ;;  %v518_v25 = vmul.f32 %v464_v10, %v464_v10  ;;  %v519_v26 = vmul.f32 %v465_v13, %v465_v13  ;;  %454 = vst.msk [vmem:[%s847_s27 + $0x30] sm:$0xf] %vm441_vm1, %v740_v35 }
  0xf7   : > { %v482_v18 = vsel %vm474_vm2, %v462_v14, 0.0  ;;  %v516_v19 = vmul.f32 %v462_v14, %v462_v14  ;;  %v517_v20 = vmul.f32 %v463_v15, %v463_v15  ;;  %v484_v27 = vsel %vm474_vm2, %v463_v15, 0.0 }
  0xf8   : > { %v483_v22 = vadd.f32 %v482_v18, %v481_v11  ;;  %v467_v41 = vunpack.c.h.bf16 %v381_v31  ;;  %v488_v42 = vsel %vm474_vm2, %v465_v13, 0.0  ;;  %v539_v43 = vsel %vm474_vm2, %v518_v25, 0.0 }
  0xf9   : > { %v535_v28 = vsel %vm474_vm2, %v516_v19, 0.0  ;;  %v537_v33 = vsel %vm474_vm2, %v517_v20, 0.0  ;;  %v743_v37 = vpack.c.bf16 %v770_v12, %v770_v12  ;;  %v383_v45 = vpack.c.bf16 %v365_v16, %v362_v8 }
  0xfa   : > { %v485_v29 = vadd.f32 %v484_v27, %v483_v22  ;;  %v536_v30 = vadd.f32 %v535_v28, %v534_v23  ;;  %v469_v47 = vunpack.c.h.bf16 %v863_v44  ;;  %v541_v49 = vsel %vm474_vm2, %v519_v26, 0.0 }
  0xfb   : > { %v490_v50 = vsel %vm474_vm2, %v466_v40, 0.0  ;;  %v520_v51 = vmul.f32 %v466_v40, %v466_v40  ;;  %v521_v52 = vmul.f32 %v467_v41, %v467_v41  ;;  %457 = vst.msk [vmem:[%s847_s27 + $0x3c] sm:$0xf] %vm441_vm1, %v743_v37  ;;  %v522_v53 = vmul.f32 %v468_v24, %v468_v24 }
  0xfc   : > { %v487_v38 = vadd.f32 %v486_v21, %v485_v29  ;;  %v538_v39 = vadd.f32 %v537_v33, %v536_v30  ;;  %v492_v56 = vsel %vm474_vm2, %v467_v41, 0.0  ;;  %v741_v58 = vpack.c.bf16 %v365_v16, %v365_v16 }
  0xfd   : > { %v543_v57 = vsel %vm474_vm2, %v520_v51, 0.0  ;;  %v470_v59 = vunpack.c.l.bf16 %v383_v45  ;;  %v494_v61 = vsel %vm474_vm2, %v468_v24, 0.0  ;;  %v523_v62 = vmul.f32 %v469_v47, %v469_v47 }
  0xfe   : > { %v540_v46 = vadd.f32 %v539_v43, %v538_v39  ;;  %v489_v48 = vadd.f32 %v488_v42, %v487_v38  ;;  %v545_v63 = vsel %vm474_vm2, %v521_v52, 0.0  ;;  %455 = vst.msk [vmem:[%s847_s27 + $0x34] sm:$0xf] %vm441_vm1, %v741_v58  ;;  %v471_v0 = vunpack.c.h.bf16 %v383_v45 }
  0xff   : > { %v496_v3 = vsel %vm474_vm2, %v469_v47, 0.0  ;;  %v547_v4 = vsel %vm474_vm2, %v522_v53, 0.0  ;;  %v472_v5 = vunpack.c.l.bf16 %v384_v36  ;;  %v524_v6 = vmul.f32 %v470_v59, %v470_v59 }
 0x100   : > { %v491_v54 = vadd.f32 %v490_v50, %v489_v48  ;;  %v542_v55 = vadd.f32 %v541_v49, %v540_v46  ;;  %v549_v9 = vsel %vm474_vm2, %v523_v62, 0.0  ;;  %v473_v10 = vunpack.c.h.bf16 %v384_v36 }
 0x101   : > { %v498_v11 = vsel %vm474_vm2, %v470_v59, 0.0  ;;  %v525_v12 = vmul.f32 %v471_v0, %v471_v0  ;;  %v526_v15 = vmul.f32 %v472_v5, %v472_v5  ;;  %v500_v16 = vsel %vm474_vm2, %v471_v0, 0.0 }
 0x102   : > { %v493_v44 = vadd.f32 %v492_v56, %v491_v54  ;;  %v544_v60 = vadd.f32 %v543_v57, %v542_v55  ;;  %v551_v17 = vsel %vm474_vm2, %v524_v6, 0.0  ;;  %v502_v20 = vsel %vm474_vm2, %v472_v5, 0.0 }
 0x103   : > { %v527_v21 = vmul.f32 %v473_v10, %v473_v10  ;;  %v553_v22 = vsel %vm474_vm2, %v525_v12, 0.0  ;;  %v504_v25 = vsel %vm474_vm2, %v473_v10, 0.0  ;;  %v555_v26 = vsel %vm474_vm2, %v526_v15, 0.0 }
 0x104   : > { %v495_v1 = vadd.f32 %v494_v61, %v493_v44  ;;  %v546_v2 = vadd.f32 %v545_v63, %v544_v60  ;;  %v565_v32 = vlaneseq }
 0x105   : > { %v557_v29 = vsel %vm474_vm2, %v527_v21, 0.0 }
 0x106   : > { %v548_v7 = vadd.f32 %v547_v4, %v546_v2  ;;  %v497_v8 = vadd.f32 %v496_v3, %v495_v1  ;;  %v566_v38 = vshrl.u32 %v565_v32, 7 }
 0x108   : > { %v499_v13 = vadd.f32 %v498_v11, %v497_v8  ;;  %v550_v14 = vadd.f32 %v549_v9, %v548_v7  ;;  %vm567_vm3 = vcmp.eq.s32.totalorder %v566_v38, 0 }
 0x10a   : > { %v501_v18 = vadd.f32 %v500_v16, %v499_v13  ;;  %v552_v19 = vadd.f32 %v551_v17, %v550_v14 }
 0x10c   : > { %v503_v23 = vadd.f32 %v502_v20, %v501_v18  ;;  %v554_v24 = vadd.f32 %v553_v22, %v552_v19 }
 0x10e   : > { %v505_v27 = vadd.f32 %v504_v25, %v503_v23  ;;  %v556_v28 = vadd.f32 %v555_v26, %v554_v24 }
 0x110   : > { %v506_v30 = vrot.slane %v505_v27, 4  ;;  %v558_v31 = vadd.f32 %v557_v29, %v556_v28 }
 0x112   : > { %v507_v33 = vadd.f32 %v506_v30, %v505_v27  ;;  %v559_v34 = vrot.slane %v558_v31, 4 }
 0x114   : > { %v508_v35 = vrot.slane %v507_v33, 2  ;;  %v560_v36 = vadd.f32 %v559_v34, %v558_v31 }
 0x116   : > { %v509_v39 = vadd.f32 %v508_v35, %v507_v33  ;;  %v561_v40 = vrot.slane %v560_v36, 2 }
 0x118   : > { %v510_v41 = vrot.slane %v509_v39, 1  ;;  %v562_v42 = vadd.f32 %v561_v40, %v560_v36 }
 0x11a   : > { %v511_v43 = vadd.f32 %v510_v41, %v509_v39  ;;  %v563_v37 = vrot.slane %v562_v42, 1 }
 0x11c   : > { %v564_v45 = vadd.f32 %v563_v37, %v562_v42  ;;  %v568_v46 = vsel %vm567_vm3, %v511_v43, 0.0 }
 0x11d   : > { %569 = vst.msk [vmem:[%s217_s5] sm:$0xff] %vm474_vm2, %v568_v46 }
 0x11e   : > { %v570_v47 = vsel %vm567_vm3, %v564_v45, 0.0 }
 0x11f   : > { %571 = vst.msk [vmem:[%s221_s8] sm:$0xff] %vm474_vm2, %v570_v47 }
 0x120 PF: > { %s15_s15 = sadd.s32 1, %s788_s15  }
 0x121   : > { %p12_p5 = scmp.ge.s32.totalorder %s15_s15, 6  }
 0x123   :  { %14 = sbr.rel (!%p12_p5) target bundleno = 1 (0x1), region = 82 }

// kernel: decoder_block_forward.7
= control target key start
LH: loop header
LB: loop body
LE: loop exit
PB: predicated region body
PF: predicated region fallthrough
CT: control target
= control target key end

     0   :  { %s429_s12 = smov 0   ;;  %s536_s0 = inlined_call_operand.vmem [shape: bf16[512,8], index: 0, kind: input, shape index: {}]   ;;  %s537_s1 = inlined_call_operand.vmem [shape: f32[1,8], index: 1, kind: input, shape index: {}]   ;;  %s538_s2 = inlined_call_operand.vmem [shape: f32[1,8], index: 2, kind: input, shape index: {}]   ;;  %s539_s3 = inlined_call_operand.vmem [shape: f32[512,8], index: 3, kind: output, shape index: {}]  }
   0x1 LB: > { %s341_s13 = sadd.s32 4294967295, %s407_s12   ;;  %p345_p0 = scmp.ge.s32.totalorder %s407_s12, 1  ;;  %s407_s12 = sphi %s429_s12, %s13_s12  }
   0x2   : > { %p138_p1 = scmp.lt.s32.totalorder %s407_s12, 5 }
   0x4   : > { %p139_p2 = pnand %p345_p0, %p138_p1 }
   0x5   : > { %s346_s14 = sshll.u32 (!%p139_p2), %s341_s13, 4  ;;  %v448_v0 = vld [vmem:[%s537_s1] ss:$0 sm:$0xff] (!%p139_p2)  ;;  %vm268_vm0 = vcmask (!%p139_p2), 64512  }
   0x6   : > { %142 = sbr.rel (%p139_p2) target bundleno = 37 (0x25), region = 32  ;;  %p163_p3 = scmp.lt.s32.totalorder (!%p139_p2), %s346_s14, 63  ;;  %v457_v9 = vld [vmem:[%s538_s2] ss:$0 sm:$0xff] (!%p139_p2) }
   0xd   : > { %s541_s14 = smov (!%p163_p3, %s346_s14), 63 }
   0xe   : > { %s347_s15 = sshll.u32 %s541_s14, 2  ;;  %s349_s23 = sshll.u32 %s541_s14, 3 }
   0xf   : > { %s443_s18 = scalar_lea.vmem %s536_s0, %s347_s15  ;;  %s475_s26 = scalar_lea.vmem %s539_s3, %s349_s23 }
  0x10   : > { %v355_v1 = vld [vmem:[%s443_s18] sm:$0xff]   ;;  %v386_v2 = vld [vmem:[%s443_s18 + $0x8] sm:$0xff]   ;;  %v387_v3 = vld [vmem:[%s443_s18 + $0x10] sm:$0xff]  }
  0x11   : > { %v356_v4 = vunpack.c.l.bf16 %v355_v1  ;;  %v357_v5 = vunpack.c.h.bf16 %v355_v1  ;;  %v360_v6 = vunpack.c.l.bf16 %v386_v2  ;;  %v361_v7 = vunpack.c.h.bf16 %v386_v2  ;;  %v388_v8 = vld [vmem:[%s443_s18 + $0x18] sm:$0xff]   ;;  %v389_v30 = vld [vmem:[%s443_s18 + $0x20] sm:$0xff]   ;;  %v390_v31 = vld [vmem:[%s443_s18 + $0x28] sm:$0xff]  }
  0x12   : > { %v364_v10 = vunpack.c.l.bf16 %v387_v3  ;;  %v365_v11 = vunpack.c.h.bf16 %v387_v3  ;;  %v368_v12 = vunpack.c.l.bf16 %v388_v8  ;;  %v369_v13 = vunpack.c.h.bf16 %v388_v8  ;;  %v391_v36 = vld [vmem:[%s443_s18 + $0x30] sm:$0xff]   ;;  %v392_v37 = vld [vmem:[%s443_s18 + $0x38] sm:$0xff]  }
  0x13   : > { %v213_v14 = vmul.f32 %v356_v4, %v448_v0  ;;  %v214_v15 = vmul.f32 %v357_v5, %v448_v0  ;;  %v215_v16 = vmul.f32 %v360_v6, %v448_v0  ;;  %v216_v17 = vmul.f32 %v361_v7, %v448_v0 }
  0x14   : > { %v217_v18 = vmul.f32 %v364_v10, %v448_v0  ;;  %v218_v19 = vmul.f32 %v365_v11, %v448_v0  ;;  %v219_v20 = vmul.f32 %v368_v12, %v448_v0  ;;  %v220_v21 = vmul.f32 %v369_v13, %v448_v0 }
  0x15   : > { %v236_v22 = vadd.f32 %v457_v9, %v213_v14  ;;  %v237_v23 = vadd.f32 %v457_v9, %v214_v15  ;;  %v238_v24 = vadd.f32 %v457_v9, %v215_v16  ;;  %v239_v25 = vadd.f32 %v457_v9, %v216_v17 }
  0x16   : > { %v240_v26 = vadd.f32 %v457_v9, %v217_v18  ;;  %v241_v27 = vadd.f32 %v457_v9, %v218_v19  ;;  %v242_v28 = vadd.f32 %v457_v9, %v219_v20  ;;  %v243_v29 = vadd.f32 %v457_v9, %v220_v21 }
  0x17   : > { %v252_v32 = vmax.f32 %v236_v22, 0.0  ;;  %v253_v33 = vmax.f32 %v237_v23, 0.0  ;;  %v254_v34 = vmax.f32 %v238_v24, 0.0  ;;  %v255_v35 = vmax.f32 %v239_v25, 0.0 }
  0x18   : > { %v256_v38 = vmax.f32 %v240_v26, 0.0  ;;  %v257_v39 = vmax.f32 %v241_v27, 0.0  ;;  %v258_v40 = vmax.f32 %v242_v28, 0.0  ;;  %v259_v41 = vmax.f32 %v243_v29, 0.0 }
  0x19   : > { %269 = vst.msk [vmem:[%s475_s26] sm:$0xff] %vm268_vm0, %v252_v32  ;;  %270 = vst.msk [vmem:[%s475_s26 + $0x8] sm:$0xff] %vm268_vm0, %v253_v33  ;;  %v372_v42 = vunpack.c.l.bf16 %v389_v30  ;;  %v373_v43 = vunpack.c.h.bf16 %v389_v30  ;;  %v376_v44 = vunpack.c.l.bf16 %v390_v31  ;;  %v377_v45 = vunpack.c.h.bf16 %v390_v31 }
  0x1a   : > { %271 = vst.msk [vmem:[%s475_s26 + $0x10] sm:$0xff] %vm268_vm0, %v254_v34  ;;  %272 = vst.msk [vmem:[%s475_s26 + $0x18] sm:$0xff] %vm268_vm0, %v255_v35  ;;  %v380_v46 = vunpack.c.l.bf16 %v391_v36  ;;  %v381_v47 = vunpack.c.h.bf16 %v391_v36  ;;  %v384_v48 = vunpack.c.l.bf16 %v392_v37  ;;  %v385_v49 = vunpack.c.h.bf16 %v392_v37 }
  0x1b   : > { %273 = vst.msk [vmem:[%s475_s26 + $0x20] sm:$0xff] %vm268_vm0, %v256_v38  ;;  %274 = vst.msk [vmem:[%s475_s26 + $0x28] sm:$0xff] %vm268_vm0, %v257_v39  ;;  %v221_v50 = vmul.f32 %v372_v42, %v448_v0  ;;  %v222_v51 = vmul.f32 %v373_v43, %v448_v0  ;;  %v223_v52 = vmul.f32 %v376_v44, %v448_v0 }
  0x1c   : > { %275 = vst.msk [vmem:[%s475_s26 + $0x30] sm:$0xff] %vm268_vm0, %v258_v40  ;;  %276 = vst.msk [vmem:[%s475_s26 + $0x38] sm:$0xff] %vm268_vm0, %v259_v41  ;;  %v224_v53 = vmul.f32 %v377_v45, %v448_v0  ;;  %v225_v54 = vmul.f32 %v380_v46, %v448_v0  ;;  %v226_v55 = vmul.f32 %v381_v47, %v448_v0 }
  0x1d   : > { %v227_v56 = vmul.f32 %v384_v48, %v448_v0  ;;  %v228_v57 = vmul.f32 %v385_v49, %v448_v0  ;;  %v244_v58 = vadd.f32 %v457_v9, %v221_v50  ;;  %v245_v59 = vadd.f32 %v457_v9, %v222_v51 }
  0x1e   : > { %v246_v60 = vadd.f32 %v457_v9, %v223_v52  ;;  %v247_v61 = vadd.f32 %v457_v9, %v224_v53  ;;  %v248_v62 = vadd.f32 %v457_v9, %v225_v54  ;;  %v249_v63 = vadd.f32 %v457_v9, %v226_v55 }
  0x1f   : > { %v250_v0 = vadd.f32 %v457_v9, %v227_v56  ;;  %v251_v1 = vadd.f32 %v457_v9, %v228_v57  ;;  %v260_v2 = vmax.f32 %v244_v58, 0.0  ;;  %v261_v3 = vmax.f32 %v245_v59, 0.0 }
  0x20   : > { %v262_v4 = vmax.f32 %v246_v60, 0.0  ;;  %v263_v5 = vmax.f32 %v247_v61, 0.0  ;;  %v264_v6 = vmax.f32 %v248_v62, 0.0  ;;  %v265_v7 = vmax.f32 %v249_v63, 0.0 }
  0x21   : > { %v266_v8 = vmax.f32 %v250_v0, 0.0  ;;  %v267_v10 = vmax.f32 %v251_v1, 0.0  ;;  %277 = vst.msk [vmem:[%s475_s26 + $0x40] sm:$0xff] %vm268_vm0, %v260_v2  ;;  %278 = vst.msk [vmem:[%s475_s26 + $0x48] sm:$0xff] %vm268_vm0, %v261_v3 }
  0x22   : > { %279 = vst.msk [vmem:[%s475_s26 + $0x50] sm:$0xff] %vm268_vm0, %v262_v4  ;;  %280 = vst.msk [vmem:[%s475_s26 + $0x58] sm:$0xff] %vm268_vm0, %v263_v5 }
  0x23   : > { %281 = vst.msk [vmem:[%s475_s26 + $0x60] sm:$0xff] %vm268_vm0, %v264_v6  ;;  %282 = vst.msk [vmem:[%s475_s26 + $0x68] sm:$0xff] %vm268_vm0, %v265_v7 }
  0x24   : > { %283 = vst.msk [vmem:[%s475_s26 + $0x70] sm:$0xff] %vm268_vm0, %v266_v8  ;;  %284 = vst.msk [vmem:[%s475_s26 + $0x78] sm:$0xff] %vm268_vm0, %v267_v10 }
  0x25 PF: > { %s13_s12 = sadd.s32 1, %s407_s12  }
  0x26   : > { %p10_p4 = scmp.ge.s32.totalorder %s13_s12, 6  }
  0x28   :  { %12 = sbr.rel (!%p10_p4) target bundleno = 1 (0x1), region = 62 }

// kernel: decoder_block_forward.6
= control target key start
LH: loop header
LB: loop body
LE: loop exit
PB: predicated region body
PF: predicated region fallthrough
CT: control target
= control target key end

     0   :  { %s995_s21 = smov 0   ;;  %s1161_s0 = inlined_call_operand.vmem [shape: bf16[512,4], index: 0, kind: input, shape index: {}]   ;;  %s1162_s1 = inlined_call_operand.vmem [shape: bf16[4,8], index: 1, kind: input, shape index: {}]   ;;  %s1163_s2 = inlined_call_operand.vmem [shape: f32[1,4], index: 2, kind: input, shape index: {}]   ;;  %s1164_s3 = inlined_call_operand.vmem [shape: f32[1,4], index: 3, kind: input, shape index: {}]   ;;  %s1165_s4 = inlined_call_operand.vmem [shape: bf16[512,8], index: 4, kind: output, shape index: {0}]   ;;  %s1166_s5 = inlined_call_operand.vmem [shape: f32[32,8], index: 5, kind: output, shape index: {1}]   ;;  %s1167_s6 = inlined_call_operand.vmem [shape: f32[32,8], index: 6, kind: output, shape index: {2}]  }
   0x1 LB: > { %s1001_s22 = sadd.s32 4294967295, %s958_s21   ;;  %p823_p0 = scmp.ge.s32.totalorder %s958_s21, 1  ;;  %s958_s21 = sphi %s995_s21, %s17_s21  }
   0x2   : > { %p218_p1 = scmp.lt.s32.totalorder %s958_s21, 5 }
   0x4   : > { %p219_p2 = pnand %p823_p0, %p218_p1 }
   0x5   : > { %v379_v0 = vld [vmem:[%s1162_s1] sm:$0x3] (!%p219_p2)  ;;  %vm405_vm0 = vcmask (!%p219_p2), 1041408   ;;  %s824_s25 = sshll.u32 (!%p219_p2), %s1001_s22, 4  ;;  %vm380_vm1 = vcmask (!%p219_p2), 31744   ;;  %vm570_vm2 = vcmask (!%p219_p2), 60416  }
   0x6   : > { %222 = sbr.rel (%p219_p2) target bundleno = 296 (0x128), region = 36  ;;  %942 = vmatprep.subr.msk.bf16.mxu0 (!%p219_p2), %vm405_vm0, %v379_v0  ;;  %v407_v1 = vsel (!%p219_p2), %vm405_vm0, %v379_v0, 0  ;;  %p257_p3 = scmp.lt.s32.totalorder (!%p219_p2), %s824_s25, 63  ;;  %943 = vmatprep.subr.msk.bf16.mxu1 (!%p219_p2), %vm405_vm0, %v379_v0  ;;  %v1022_v2 = vld [vmem:[%s1163_s2] ss:$0 sm:$0xff] (!%p219_p2)  ;;  %vm603_vm3 = vcmask (!%p219_p2), 64512  }
   0x7   : > { %923 = vmatpush3.bf16.msra.mxu0 (!%p219_p2), %v407_v1  ;;  %941 = vmatpush3.bf16.msra.mxu1 (!%p219_p2), %v407_v1  ;;  %v1031_v11 = vld [vmem:[%s1164_s3] ss:$0 sm:$0xff] (!%p219_p2)  ;;  %p268_p4 = scmp.lt.s32.totalorder (!%p219_p2), %s1001_s22, 3 }
   0xd   : > { %s1169_s25 = smov (!%p257_p3, %s824_s25), 63  ;;  %s1171_s22 = smov (!%p268_p4, %s1001_s22), 3 }
   0xe   : > { %s825_s26 = sshll.u32 %s1169_s25, 2  ;;  %s828_s13 = sshll.u32 %s1171_s22, 3 }
   0xf   : > { %s1017_s29 = scalar_lea.vmem %s1161_s0, %s825_s26  ;;  %s1082_s12 = scalar_lea.vmem %s1165_s4, %s825_s26 }
  0x10   : > { %v875_v3 = vld [vmem:[%s1017_s29] sm:$0xff]   ;;  %v906_v4 = vld [vmem:[%s1017_s29 + $0x8] sm:$0xff]   ;;  %v907_v5 = vld [vmem:[%s1017_s29 + $0x10] sm:$0xff]   ;;  %s271_s16 = scalar_lea.vmem %s1166_s5, %s828_s13  ;;  %s275_s19 = scalar_lea.vmem %s1167_s6, %s828_s13 }
  0x11   : > { %v876_v6 = vunpack.c.l.bf16 %v875_v3  ;;  %v877_v7 = vunpack.c.h.bf16 %v875_v3  ;;  %v880_v8 = vunpack.c.l.bf16 %v906_v4  ;;  %v881_v9 = vunpack.c.h.bf16 %v906_v4  ;;  %v908_v10 = vld [vmem:[%s1017_s29 + $0x18] sm:$0xff]   ;;  %v909_v32 = vld [vmem:[%s1017_s29 + $0x20] sm:$0xff]   ;;  %v910_v37 = vld [vmem:[%s1017_s29 + $0x28] sm:$0xff]  }
  0x12   : > { %v884_v12 = vunpack.c.l.bf16 %v907_v5  ;;  %v885_v13 = vunpack.c.h.bf16 %v907_v5  ;;  %v888_v14 = vunpack.c.l.bf16 %v908_v10  ;;  %v889_v15 = vunpack.c.h.bf16 %v908_v10  ;;  %v911_v42 = vld [vmem:[%s1017_s29 + $0x30] sm:$0xff]   ;;  %v912_v47 = vld [vmem:[%s1017_s29 + $0x38] sm:$0xff]  }
  0x13   : > { %v316_v16 = vmul.f32 %v876_v6, %v1022_v2  ;;  %v317_v17 = vmul.f32 %v877_v7, %v1022_v2  ;;  %v318_v18 = vmul.f32 %v880_v8, %v1022_v2  ;;  %v319_v19 = vmul.f32 %v881_v9, %v1022_v2 }
  0x14   : > { %v320_v20 = vmul.f32 %v884_v12, %v1022_v2  ;;  %v321_v21 = vmul.f32 %v885_v13, %v1022_v2  ;;  %v322_v22 = vmul.f32 %v888_v14, %v1022_v2  ;;  %v323_v23 = vmul.f32 %v889_v15, %v1022_v2 }
  0x15   : > { %v339_v24 = vadd.f32 %v1031_v11, %v316_v16  ;;  %v340_v25 = vadd.f32 %v1031_v11, %v317_v17  ;;  %v341_v26 = vadd.f32 %v1031_v11, %v318_v18  ;;  %v342_v27 = vadd.f32 %v1031_v11, %v319_v19 }
  0x16   : > { %v343_v28 = vadd.f32 %v1031_v11, %v320_v20  ;;  %v344_v29 = vadd.f32 %v1031_v11, %v321_v21  ;;  %v345_v30 = vadd.f32 %v1031_v11, %v322_v22  ;;  %v346_v31 = vadd.f32 %v1031_v11, %v323_v23 }
  0x17   : > { %v355_v33 = vmax.f32 %v339_v24, 0.0  ;;  %v356_v34 = vmax.f32 %v340_v25, 0.0  ;;  %v357_v35 = vmax.f32 %v341_v26, 0.0  ;;  %v358_v36 = vmax.f32 %v342_v27, 0.0 }
  0x18   : > { %v359_v38 = vmax.f32 %v343_v28, 0.0  ;;  %v360_v39 = vmax.f32 %v344_v29, 0.0  ;;  %v361_v40 = vmax.f32 %v345_v30, 0.0  ;;  %v362_v41 = vmax.f32 %v346_v31, 0.0 }
  0x19   : > { %v371_v43 = vpack.c.bf16 %v356_v34, %v355_v33  ;;  %v372_v44 = vpack.c.bf16 %v358_v36, %v357_v35  ;;  %v892_v45 = vunpack.c.l.bf16 %v909_v32  ;;  %v893_v46 = vunpack.c.h.bf16 %v909_v32 }
  0x1a   : > { %v373_v48 = vpack.c.bf16 %v360_v39, %v359_v38  ;;  %v374_v49 = vpack.c.bf16 %v362_v41, %v361_v40  ;;  %v896_v50 = vunpack.c.l.bf16 %v910_v37  ;;  %v897_v51 = vunpack.c.h.bf16 %v910_v37 }
  0x1b   : > { %924 = vmatprep.mubr.msk.bf16.mxu0 %vm380_vm1, %v371_v43  ;;  %v324_v52 = vmul.f32 %v892_v45, %v1022_v2  ;;  %v325_v53 = vmul.f32 %v893_v46, %v1022_v2  ;;  %v900_v54 = vunpack.c.l.bf16 %v911_v42  ;;  %v901_v55 = vunpack.c.h.bf16 %v911_v42 }
  0x1c   : > { %925 = vmatmul.mubr.msk.bf16.vlgmr.msra.gmra.mrb[0].mxu0 %vm380_vm1, %v372_v44  ;;  %v326_v56 = vmul.f32 %v896_v50, %v1022_v2  ;;  %v327_v57 = vmul.f32 %v897_v51, %v1022_v2  ;;  %v904_v58 = vunpack.c.l.bf16 %v912_v47  ;;  %v905_v59 = vunpack.c.h.bf16 %v912_v47 }
  0x1d   : > { %928 = vmatprep.mubr.msk.bf16.mxu0 %vm380_vm1, %v373_v48  ;;  %v347_v60 = vadd.f32 %v1031_v11, %v324_v52  ;;  %v348_v61 = vadd.f32 %v1031_v11, %v325_v53  ;;  %v328_v62 = vmul.f32 %v900_v54, %v1022_v2  ;;  %v329_v63 = vmul.f32 %v901_v55, %v1022_v2 }
  0x1e   : > { %v349_v0 = vadd.f32 %v1031_v11, %v326_v56  ;;  %v350_v1 = vadd.f32 %v1031_v11, %v327_v57  ;;  %v330_v3 = vmul.f32 %v904_v58, %v1022_v2  ;;  %v331_v4 = vmul.f32 %v905_v59, %v1022_v2 }
  0x1f   : > { %v363_v5 = vmax.f32 %v347_v60, 0.0  ;;  %v364_v6 = vmax.f32 %v348_v61, 0.0  ;;  %v351_v7 = vadd.f32 %v1031_v11, %v328_v62  ;;  %v352_v8 = vadd.f32 %v1031_v11, %v329_v63 }
  0x20   : > { %v365_v9 = vmax.f32 %v349_v0, 0.0  ;;  %v366_v10 = vmax.f32 %v350_v1, 0.0  ;;  %v353_v12 = vadd.f32 %v1031_v11, %v330_v3  ;;  %v354_v13 = vadd.f32 %v1031_v11, %v331_v4 }
  0x21   : > { %v375_v14 = vpack.c.bf16 %v364_v6, %v363_v5  ;;  %v367_v15 = vmax.f32 %v351_v7, 0.0  ;;  %v368_v16 = vmax.f32 %v352_v8, 0.0 }
  0x22   : > { %v376_v17 = vpack.c.bf16 %v366_v10, %v365_v9  ;;  %v369_v18 = vmax.f32 %v353_v12, 0.0  ;;  %v370_v19 = vmax.f32 %v354_v13, 0.0 }
  0x23   : > { %932 = vmatprep.mubr.msk.bf16.mxu1 %vm380_vm1, %v375_v14  ;;  %v377_v2 = vpack.c.bf16 %v368_v16, %v367_v15 }
  0x24   : > { %929 = vmatmul.mubr.msk.bf16.gmra.mrb[4].mxu0 %vm380_vm1, %v374_v49  ;;  %933 = vmatmul.mubr.msk.bf16.vlgmr.msra.gmra.mrb[0].mxu1 %vm380_vm1, %v376_v17  ;;  %v378_v20 = vpack.c.bf16 %v370_v19, %v369_v18 }
  0x25   : > { %936 = vmatprep.mubr.msk.bf16.mxu1 %vm380_vm1, %v377_v2 }
  0x2c   : > { %937 = vmatmul.mubr.msk.bf16.gmra.mrb[4].mxu1 %vm380_vm1, %v378_v20 }
  0xef   : > { %v926_v11 = vpop.f32.mrb[0].mxu0 }
  0xf0   : > { %v860_v21 = vpack.c.bf16 %v926_v11, %v926_v11  ;;  %v443_v22 = vpop.f32.mrb[1].mxu0 }
  0xf1   : > { %v858_v23 = vpack.c.bf16 %v443_v22, %v443_v22  ;;  %v927_v24 = vpop.f32.mrb[2].mxu0 }
  0xf2   : > { %573 = vst.msk [vmem:[%s1082_s12 + $0x8] sm:$0xf] %vm570_vm2, %v860_v21  ;;  %v507_v25 = vpack.c.bf16 %v927_v24, %v926_v11  ;;  %v861_v26 = vpack.c.bf16 %v927_v24, %v927_v24  ;;  %v446_v27 = vpop.f32.mrb[3].mxu0 }
  0xf3   : > { %571 = vst.msk [vmem:[%s1082_s12] sm:$0xf] %vm570_vm2, %v858_v23  ;;  %v506_v28 = vpack.c.bf16 %v446_v27, %v443_v22  ;;  %v859_v29 = vpack.c.bf16 %v446_v27, %v446_v27 }
  0xf4   : > { %574 = vst.msk [vmem:[%s1082_s12 + $0xc] sm:$0xf] %vm570_vm2, %v861_v26  ;;  %v589_v30 = vunpack.c.l.bf16 %v507_v25  ;;  %v590_v31 = vunpack.c.h.bf16 %v507_v25 }
  0xf5   : > { %572 = vst.msk [vmem:[%s1082_s12 + $0x4] sm:$0xf] %vm570_vm2, %v859_v29  ;;  %v587_v32 = vunpack.c.l.bf16 %v506_v28  ;;  %v588_v33 = vunpack.c.h.bf16 %v506_v28 }
  0xf6   : > { %v607_v34 = vsel %vm603_vm3, %v589_v30, 0.0  ;;  %v609_v35 = vsel %vm603_vm3, %v590_v31, 0.0  ;;  %v643_v36 = vmul.f32 %v589_v30, %v589_v30  ;;  %v644_v43 = vmul.f32 %v590_v31, %v590_v31 }
  0xf7   : > { %v604_v37 = vsel %vm603_vm3, %v587_v32, 0.0  ;;  %v605_v38 = vsel %vm603_vm3, %v588_v33, 0.0  ;;  %v641_v39 = vmul.f32 %v587_v32, %v587_v32  ;;  %v642_v40 = vmul.f32 %v588_v33, %v588_v33  ;;  %v930_v41 = vpop.f32.mrb[4].mxu0  ;;  %v934_v42 = vpop.f32.mrb[0].mxu1 }
  0xf8   : > { %v660_v44 = vsel %vm603_vm3, %v643_v36, 0.0  ;;  %v606_v45 = vadd.f32 %v605_v38, %v604_v37  ;;  %v864_v46 = vpack.c.bf16 %v930_v41, %v930_v41  ;;  %v459_v47 = vpop.f32.mrb[5].mxu0  ;;  %v475_v48 = vpop.f32.mrb[1].mxu1  ;;  %v868_v53 = vpack.c.bf16 %v934_v42, %v934_v42 }
  0xf9   : > { %v657_v49 = vsel %vm603_vm3, %v641_v39, 0.0  ;;  %v658_v50 = vsel %vm603_vm3, %v642_v40, 0.0  ;;  %v862_v51 = vpack.c.bf16 %v459_v47, %v459_v47  ;;  %v931_v52 = vpop.f32.mrb[6].mxu0  ;;  %v935_v54 = vpop.f32.mrb[2].mxu1  ;;  %v866_v63 = vpack.c.bf16 %v475_v48, %v475_v48 }
  0xfa   : > { %v608_v55 = vadd.f32 %v607_v34, %v606_v45  ;;  %v659_v56 = vadd.f32 %v658_v50, %v657_v49  ;;  %577 = vst.msk [vmem:[%s1082_s12 + $0x18] sm:$0xf] %vm570_vm2, %v864_v46  ;;  %v509_v57 = vpack.c.bf16 %v931_v52, %v930_v41  ;;  %v865_v58 = vpack.c.bf16 %v931_v52, %v931_v52  ;;  %v462_v59 = vpop.f32.mrb[7].mxu0  ;;  %v478_v60 = vpop.f32.mrb[3].mxu1 }
  0xfb   : > { %575 = vst.msk [vmem:[%s1082_s12 + $0x10] sm:$0xf] %vm570_vm2, %v862_v51  ;;  %v508_v61 = vpack.c.bf16 %v462_v59, %v459_v47  ;;  %v863_v62 = vpack.c.bf16 %v462_v59, %v462_v59  ;;  %581 = vst.msk [vmem:[%s1082_s12 + $0x28] sm:$0xf] %vm570_vm2, %v868_v53  ;;  %v511_v0 = vpack.c.bf16 %v935_v54, %v934_v42  ;;  %v662_v8 = vsel %vm603_vm3, %v644_v43, 0.0 }
  0xfc   : > { %v661_v1 = vadd.f32 %v660_v44, %v659_v56  ;;  %578 = vst.msk [vmem:[%s1082_s12 + $0x1c] sm:$0xf] %vm570_vm2, %v865_v58  ;;  %v610_v3 = vadd.f32 %v609_v35, %v608_v55  ;;  %v593_v4 = vunpack.c.l.bf16 %v509_v57  ;;  %579 = vst.msk [vmem:[%s1082_s12 + $0x20] sm:$0xf] %vm570_vm2, %v866_v63  ;;  %v869_v7 = vpack.c.bf16 %v935_v54, %v935_v54 }
  0xfd   : > { %576 = vst.msk [vmem:[%s1082_s12 + $0x14] sm:$0xf] %vm570_vm2, %v863_v62  ;;  %v591_v5 = vunpack.c.l.bf16 %v508_v61  ;;  %v592_v6 = vunpack.c.h.bf16 %v508_v61  ;;  %v594_v9 = vunpack.c.h.bf16 %v509_v57  ;;  %v597_v20 = vunpack.c.l.bf16 %v511_v0 }
  0xfe   : > { %582 = vst.msk [vmem:[%s1082_s12 + $0x2c] sm:$0xf] %vm570_vm2, %v869_v7  ;;  %v663_v16 = vadd.f32 %v662_v8, %v661_v1  ;;  %v647_v2 = vmul.f32 %v593_v4, %v593_v4  ;;  %v615_v21 = vsel %vm603_vm3, %v593_v4, 0.0  ;;  %v510_v24 = vpack.c.bf16 %v478_v60, %v475_v48 }
  0xff   : > { %v611_v10 = vsel %vm603_vm3, %v591_v5, 0.0  ;;  %v645_v12 = vmul.f32 %v591_v5, %v591_v5  ;;  %v646_v13 = vmul.f32 %v592_v6, %v592_v6  ;;  %v938_v14 = vpop.f32.mrb[4].mxu1  ;;  %v613_v18 = vsel %vm603_vm3, %v592_v6, 0.0 }
 0x100   : > { %v612_v15 = vadd.f32 %v611_v10, %v610_v3  ;;  %v491_v17 = vpop.f32.mrb[5].mxu1  ;;  %v648_v26 = vmul.f32 %v594_v9, %v594_v9  ;;  %v867_v28 = vpack.c.bf16 %v478_v60, %v478_v60  ;;  %v872_v29 = vpack.c.bf16 %v938_v14, %v938_v14 }
 0x101   : > { %v664_v19 = vsel %vm603_vm3, %v645_v12, 0.0  ;;  %v939_v11 = vpop.f32.mrb[6].mxu1  ;;  %v666_v27 = vsel %vm603_vm3, %v646_v13, 0.0  ;;  %v617_v30 = vsel %vm603_vm3, %v594_v9, 0.0  ;;  %v595_v33 = vunpack.c.l.bf16 %v510_v24 }
 0x102   : > { %v614_v22 = vadd.f32 %v613_v18, %v612_v15  ;;  %v665_v23 = vadd.f32 %v664_v19, %v663_v16  ;;  %v494_v25 = vpop.f32.mrb[7].mxu1  ;;  %v668_v34 = vsel %vm603_vm3, %v647_v2, 0.0  ;;  %580 = vst.msk [vmem:[%s1082_s12 + $0x24] sm:$0xf] %vm570_vm2, %v867_v28  ;;  %v596_v35 = vunpack.c.h.bf16 %v510_v24  ;;  %585 = vst.msk [vmem:[%s1082_s12 + $0x38] sm:$0xf] %vm570_vm2, %v872_v29 }
 0x103   : > { %v870_v36 = vpack.c.bf16 %v491_v17, %v491_v17  ;;  %v513_v37 = vpack.c.bf16 %v939_v11, %v938_v14  ;;  %v598_v39 = vunpack.c.h.bf16 %v511_v0  ;;  %v649_v41 = vmul.f32 %v595_v33, %v595_v33 }
 0x104   : > { %v616_v31 = vadd.f32 %v615_v21, %v614_v22  ;;  %v667_v32 = vadd.f32 %v666_v27, %v665_v23  ;;  %v670_v42 = vsel %vm603_vm3, %v648_v26, 0.0  ;;  %v619_v43 = vsel %vm603_vm3, %v595_v33, 0.0 }
 0x105   : > { %v650_v44 = vmul.f32 %v596_v35, %v596_v35  ;;  %583 = vst.msk [vmem:[%s1082_s12 + $0x30] sm:$0xf] %vm570_vm2, %v870_v36  ;;  %v873_v45 = vpack.c.bf16 %v939_v11, %v939_v11  ;;  %v651_v48 = vmul.f32 %v597_v20, %v597_v20  ;;  %v621_v49 = vsel %vm603_vm3, %v596_v35, 0.0 }
 0x106   : > { %v669_v38 = vadd.f32 %v668_v34, %v667_v32  ;;  %v618_v40 = vadd.f32 %v617_v30, %v616_v31  ;;  %v672_v50 = vsel %vm603_vm3, %v649_v41, 0.0  ;;  %v512_v51 = vpack.c.bf16 %v494_v25, %v491_v17 }
 0x107   : > { %586 = vst.msk [vmem:[%s1082_s12 + $0x3c] sm:$0xf] %vm570_vm2, %v873_v45  ;;  %v623_v52 = vsel %vm603_vm3, %v597_v20, 0.0  ;;  %v652_v53 = vmul.f32 %v598_v39, %v598_v39  ;;  %v674_v56 = vsel %vm603_vm3, %v650_v44, 0.0  ;;  %v871_v57 = vpack.c.bf16 %v494_v25, %v494_v25 }
 0x108   : > { %v620_v46 = vadd.f32 %v619_v43, %v618_v40  ;;  %v671_v47 = vadd.f32 %v670_v42, %v669_v38  ;;  %v599_v58 = vunpack.c.l.bf16 %v512_v51  ;;  %v600_v59 = vunpack.c.h.bf16 %v512_v51 }
 0x109   : > { %v625_v62 = vsel %vm603_vm3, %v598_v39, 0.0  ;;  %v676_v63 = vsel %vm603_vm3, %v651_v48, 0.0  ;;  %v601_v0 = vunpack.c.l.bf16 %v513_v37  ;;  %584 = vst.msk [vmem:[%s1082_s12 + $0x34] sm:$0xf] %vm570_vm2, %v871_v57  ;;  %v678_v5 = vsel %vm603_vm3, %v652_v53, 0.0 }
 0x10a   : > { %v622_v54 = vadd.f32 %v621_v49, %v620_v46  ;;  %v673_v55 = vadd.f32 %v672_v50, %v671_v47  ;;  %v653_v1 = vmul.f32 %v599_v58, %v599_v58  ;;  %v602_v6 = vunpack.c.h.bf16 %v513_v37 }
 0x10b   : > { %v627_v7 = vsel %vm603_vm3, %v599_v58, 0.0  ;;  %v654_v8 = vmul.f32 %v600_v59, %v600_v59  ;;  %v655_v12 = vmul.f32 %v601_v0, %v601_v0  ;;  %v629_v13 = vsel %vm603_vm3, %v600_v59, 0.0 }
 0x10c   : > { %v624_v60 = vadd.f32 %v623_v52, %v622_v54  ;;  %v675_v61 = vadd.f32 %v674_v56, %v673_v55  ;;  %v680_v14 = vsel %vm603_vm3, %v653_v1, 0.0  ;;  %v631_v17 = vsel %vm603_vm3, %v601_v0, 0.0 }
 0x10d   : > { %v656_v2 = vmul.f32 %v602_v6, %v602_v6  ;;  %v682_v18 = vsel %vm603_vm3, %v654_v8, 0.0  ;;  %v633_v11 = vsel %vm603_vm3, %v602_v6, 0.0  ;;  %v684_v21 = vsel %vm603_vm3, %v655_v12, 0.0 }
 0x10e   : > { %v677_v3 = vadd.f32 %v676_v63, %v675_v61  ;;  %v626_v4 = vadd.f32 %v625_v62, %v624_v60  ;;  %v694_v27 = vlaneseq }
 0x10f   : > { %v686_v24 = vsel %vm603_vm3, %v656_v2, 0.0 }
 0x110   : > { %v628_v9 = vadd.f32 %v627_v7, %v626_v4  ;;  %v679_v10 = vadd.f32 %v678_v5, %v677_v3  ;;  %v695_v32 = vshrl.u32 %v694_v27, 7 }
 0x112   : > { %v630_v15 = vadd.f32 %v629_v13, %v628_v9  ;;  %v681_v16 = vadd.f32 %v680_v14, %v679_v10  ;;  %vm696_vm4 = vcmp.eq.s32.totalorder %v695_v32, 0 }
 0x114   : > { %v632_v19 = vadd.f32 %v631_v17, %v630_v15  ;;  %v683_v20 = vadd.f32 %v682_v18, %v681_v16 }
 0x116   : > { %v634_v22 = vadd.f32 %v633_v11, %v632_v19  ;;  %v685_v23 = vadd.f32 %v684_v21, %v683_v20 }
 0x118   : > { %v635_v25 = vrot.slane %v634_v22, 4  ;;  %v687_v26 = vadd.f32 %v686_v24, %v685_v23 }
 0x11a   : > { %v636_v28 = vadd.f32 %v635_v25, %v634_v22  ;;  %v688_v29 = vrot.slane %v687_v26, 4 }
 0x11c   : > { %v637_v30 = vrot.slane %v636_v28, 2  ;;  %v689_v31 = vadd.f32 %v688_v29, %v687_v26 }
 0x11e   : > { %v638_v33 = vadd.f32 %v637_v30, %v636_v28  ;;  %v690_v34 = vrot.slane %v689_v31, 2 }
 0x120   : > { %v639_v35 = vrot.slane %v638_v33, 1  ;;  %v691_v36 = vadd.f32 %v690_v34, %v689_v31 }
 0x122   : > { %v640_v37 = vadd.f32 %v639_v35, %v638_v33  ;;  %v692_v38 = vrot.slane %v691_v36, 1 }
 0x124   : > { %v693_v39 = vadd.f32 %v692_v38, %v691_v36  ;;  %v697_v40 = vsel %vm696_vm4, %v640_v37, 0.0 }
 0x125   : > { %698 = vst.msk [vmem:[%s271_s16] sm:$0xff] %vm603_vm3, %v697_v40 }
 0x126   : > { %v699_v41 = vsel %vm696_vm4, %v693_v39, 0.0 }
 0x127   : > { %700 = vst.msk [vmem:[%s275_s19] sm:$0xff] %vm603_vm3, %v699_v41 }
 0x128 PF: > { %s17_s21 = sadd.s32 1, %s958_s21  }
 0x129   : > { %p14_p5 = scmp.ge.s32.totalorder %s17_s21, 6  }
 0x12b   :  { %16 = sbr.rel (!%p14_p5) target bundleno = 1 (0x1), region = 90 }

// kernel: decoder_block_forward.5
= control target key start
LH: loop header
LB: loop body
LE: loop exit
PB: predicated region body
PF: predicated region fallthrough
CT: control target
= control target key end

     0   :  { %s3070_s21 = smov 0   ;;  %s3072_s22 = smov 0   ;;  %s3569_s0 = inlined_call_operand.vmem [shape: bf16[2,16,16,4], index: 0, kind: input, shape index: {}]   ;;  %s3570_s1 = inlined_call_operand.vmem [shape: bf16[3,3,4,4], index: 1, kind: input, shape index: {}]   ;;  %s3571_s2 = inlined_call_operand.vmem [shape: f32[1,4], index: 2, kind: input, shape index: {}]   ;;  %s3572_s3 = inlined_call_operand.vmem [shape: f32[1,4], index: 3, kind: input, shape index: {}]   ;;  %s3573_s4 = inlined_call_operand.vmem [shape: bf16[2,1,16,16,4], index: 4, kind: output, shape index: {0}]   ;;  %s3574_s5 = inlined_call_operand.vmem [shape: f32[32,4], index: 5, kind: output, shape index: {1}]   ;;  %s3575_s6 = inlined_call_operand.vmem [shape: f32[32,4], index: 6, kind: output, shape index: {2}]  }
   0x1   :  { %s3074_s23 = smov 0   ;;  %s3076_s24 = smov 0  }
   0x2   :  { %s3078_s25 = smov 0  }
   0x3 LB: > { %s26_s26 = sadd.s32 1, %s3024_s23  ;;  %s29_s27 = sadd.s32 1, %s3028_s24  ;;  %s3032_s25 = sphi %s3078_s25, %s17_s25   ;;  %s3028_s24 = sphi %s3076_s24, %s3579_s24   ;;  %s3024_s23 = sphi %s3074_s23, %s3578_s23   ;;  %s3020_s22 = sphi %s3072_s22, %s3577_s22   ;;  %s3016_s21 = sphi %s3070_s21, %s3576_s21  }
   0x4   : > { %p27_p0 = scmp.ge.s32.totalorder %s26_s26, 2  ;;  %p2374_p1 = scmp.ge.s32.totalorder %s3032_s25, 1 }
   0x5   : > { %p239_p2 = scmp.lt.s32.totalorder %s3032_s25, 5 }
   0x6   : > { %s3581_s26 = smov (%p27_p0, %s26_s26), 0  ;;  %s3583_s27 = smov (!%p27_p0, %s29_s27), %s3028_s24 }
   0x7   : > { %p240_p3 = pnand %p2374_p1, %p239_p2  ;;  %p31_p4 = scmp.ge.s32.totalorder %s3583_s27, 2 }
   0x8   : > { %vm320_vm0 = vcmask (!%p240_p3), 31744   ;;  %vm323_vm1 = vcmask (!%p240_p3), 25600   ;;  %s2381_s28 = sshll.u32 (!%p240_p3), %s3020_s22, 1  ;;  %p286_p5 = scmp.lt.s32.totalorder (!%p240_p3), %s3020_s22, 1  ;;  %v3034_v0 = vmov (!%p240_p3), 0.0  }
   0x9   : > { %s3585_s27 = smov (%p31_p4, %s3583_s27), 0  ;;  %243 = sbr.rel (%p240_p3) target bundleno = 451 (0x1c3), region = 36 }
   0xa   : > { %325 = vst.msk [vmem:[#allocation2 + $0x18] sm:$0xff] (!%p240_p3), %vm320_vm0, %v3034_v0  ;;  %321 = vst.msk [vmem:[#allocation2] sm:$0xff] (!%p240_p3), %vm320_vm0, %v3034_v0  ;;  %s303_s29 = sadd.s32 (!%p240_p3), %s3016_s21, %s2381_s28  ;;  %s3140_s30 = sshll.u32 (!%p240_p3), %s3016_s21, 3  ;;  %v3169_v1 = vld [vmem:[%s3571_s2] ss:$0 sm:$0xff] (!%p240_p3) }
   0xb   : > { %322 = vst.msk [vmem:[#allocation2 + $0x8] sm:$0xff] (!%p240_p3), %vm320_vm0, %v3034_v0  ;;  %326 = vst.msk [vmem:[#allocation2 + $0x20] sm:$0xff] (!%p240_p3), %vm320_vm0, %v3034_v0  ;;  %p304_p6 = scmp.lt.s32.totalorder (!%p240_p3), %s303_s29, 3  ;;  %p294_p7 = scmp.lt.s32.totalorder (!%p240_p3), %s3140_s30, 15  ;;  %v3183_v10 = vld [vmem:[%s3572_s3] ss:$0 sm:$0xff] (!%p240_p3) }
   0xc   : > { %328 = vst.msk [vmem:[#allocation2 + $0x30] sm:$0xff] (!%p240_p3), %vm320_vm0, %v3034_v0  ;;  %329 = vst.msk [vmem:[#allocation2 + $0x38] sm:$0xff] (!%p240_p3), %vm320_vm0, %v3034_v0  ;;  %s2503_s20 = sshll.u32 (!%p240_p3), %s3016_s21, 6  ;;  %p2390_p8 = scmp.le.s32.totalorder (!%p240_p3), %s3140_s30, 0 }
   0xd   : > { %331 = vst.msk [vmem:[#allocation2 + $0x48] sm:$0xff] (!%p240_p3), %vm320_vm0, %v3034_v0  ;;  %332 = vst.msk [vmem:[#allocation2 + $0x50] sm:$0xff] (!%p240_p3), %vm320_vm0, %v3034_v0 }
   0xe   : > { %334 = vst.msk [vmem:[#allocation2 + $0x60] sm:$0xff] (!%p240_p3), %vm320_vm0, %v3034_v0  ;;  %335 = vst.msk [vmem:[#allocation2 + $0x68] sm:$0xff] (!%p240_p3), %vm320_vm0, %v3034_v0 }
   0xf   : > { %337 = vst.msk [vmem:[#allocation2 + $0x78] sm:$0xff] (!%p240_p3), %vm320_vm0, %v3034_v0  ;;  %338 = vst.msk [vmem:[#allocation2 + $0x80] sm:$0xff] (!%p240_p3), %vm320_vm0, %v3034_v0 }
  0x10   : > { %340 = vst.msk [vmem:[#allocation2 + $0x90] sm:$0xff] %vm320_vm0, %v3034_v0  ;;  %341 = vst.msk [vmem:[#allocation2 + $0x98] sm:$0xff] %vm320_vm0, %v3034_v0  ;;  %s3587_s22 = smov (!%p286_p5, %s3020_s22), 1  ;;  %s3589_s29 = smov (!%p304_p6, %s303_s29), 3 }
  0x11   : > { %343 = vst.msk [vmem:[#allocation2 + $0xa8] sm:$0xff] %vm320_vm0, %v3034_v0  ;;  %344 = vst.msk [vmem:[#allocation2 + $0xb0] sm:$0xff] %vm320_vm0, %v3034_v0  ;;  %s2501_s7 = sshll.u32 %s3587_s22, 7  ;;  %s2379_s8 = sshll.u32 %s3587_s22, 5 }
  0x12   : > { %346 = vst.msk [vmem:[#allocation2 + $0xc0] sm:$0xff] %vm320_vm0, %v3034_v0  ;;  %347 = vst.msk [vmem:[#allocation2 + $0xc8] sm:$0xff] %vm320_vm0, %v3034_v0  ;;  %s2382_s9 = sshll.u32 %s3589_s29, 3  ;;  %s3149_s12 = scalar_lea.vmem %s3569_s0, %s2501_s7 }
  0x13   : > { %349 = vst.msk [vmem:[#allocation2 + $0xd8] sm:$0xff] %vm320_vm0, %v3034_v0  ;;  %350 = vst.msk [vmem:[#allocation2 + $0xe0] sm:$0xff] %vm320_vm0, %v3034_v0  ;;  %s3154_s15 = scalar_lea.vmem %s3574_s5, %s2382_s9  ;;  %s3159_s18 = scalar_lea.vmem %s3575_s6, %s2382_s9 }
  0x14   : > { %327 = vst.msk [vmem:[#allocation2 + $0x28] sm:$0x3] %vm323_vm1, %v3034_v0  ;;  %324 = vst.msk [vmem:[#allocation2 + $0x10] sm:$0x3] %vm323_vm1, %v3034_v0  ;;  %s295_s19 = scalar_select %p294_p7, %s3140_s30, 15 }
  0x15   : > { %330 = vst.msk [vmem:[#allocation2 + $0x40] sm:$0x3] %vm323_vm1, %v3034_v0  ;;  %333 = vst.msk [vmem:[#allocation2 + $0x58] sm:$0x3] %vm323_vm1, %v3034_v0  ;;  %s3164_s28 = scalar_lea.vmem %s3149_s12, %s2503_s20 }
  0x16   : > { %336 = vst.msk [vmem:[#allocation2 + $0x70] sm:$0x3] %vm323_vm1, %v3034_v0  ;;  %339 = vst.msk [vmem:[#allocation2 + $0x88] sm:$0x3] %vm323_vm1, %v3034_v0  ;;  %s2378_s22 = sshll.u32 %s295_s19, 1  ;;  %v2523_v2 = vld [vmem:[%s3164_s28] sm:$0xff]  }
  0x17   : > { %342 = vst.msk [vmem:[#allocation2 + $0xa0] sm:$0x3] %vm323_vm1, %v3034_v0  ;;  %345 = vst.msk [vmem:[#allocation2 + $0xb8] sm:$0x3] %vm323_vm1, %v3034_v0  ;;  %s298_s7 = sadd.s32 %s2379_s8, %s2378_s22  ;;  %v2562_v3 = vld [vmem:[%s3164_s28 + $0x8] sm:$0xff]   ;;  %v2563_v4 = vld [vmem:[%s3164_s28 + $0x10] sm:$0xff]   ;;  %v2524_v5 = vunpack.c.l.bf16 %v2523_v2  ;;  %v2525_v6 = vunpack.c.h.bf16 %v2523_v2 }
  0x18   : > { %348 = vst.msk [vmem:[#allocation2 + $0xd0] sm:$0x3] %vm323_vm1, %v3034_v0  ;;  %351 = vst.msk [vmem:[#allocation2 + $0xe8] sm:$0x3] %vm323_vm1, %v3034_v0  ;;  %s2380_s9 = sshll.u32 %s298_s7, 2  ;;  %v2528_v7 = vunpack.c.l.bf16 %v2562_v3  ;;  %v2529_v8 = vunpack.c.h.bf16 %v2562_v3  ;;  %v2564_v9 = vld [vmem:[%s3164_s28 + $0x18] sm:$0xff]   ;;  %v2532_v11 = vunpack.c.l.bf16 %v2563_v4  ;;  %v2533_v12 = vunpack.c.h.bf16 %v2563_v4 }
  0x19   : > { %s3178_s13 = scalar_lea.vmem %s3573_s4, %s2380_s9  ;;  %v2536_v13 = vunpack.c.l.bf16 %v2564_v9  ;;  %v2537_v14 = vunpack.c.h.bf16 %v2564_v9  ;;  %v394_v15 = vmul.f32 %v2524_v5, %v3169_v1  ;;  %v395_v16 = vmul.f32 %v2525_v6, %v3169_v1  ;;  %v2565_v31 = vld [vmem:[%s3164_s28 + $0x20] sm:$0xff]   ;;  %v2566_v32 = vld [vmem:[%s3164_s28 + $0x28] sm:$0xff]   ;;  %v2567_v37 = vld [vmem:[%s3164_s28 + $0x30] sm:$0xff]   ;;  %s2391_s8 = sadd.s32 (!%p2390_p8), 4294967295, %s3140_s30 }
  0x1a   : > { %v396_v17 = vmul.f32 %v2528_v7, %v3169_v1  ;;  %v397_v18 = vmul.f32 %v2529_v8, %v3169_v1  ;;  %v398_v19 = vmul.f32 %v2532_v11, %v3169_v1  ;;  %v399_v20 = vmul.f32 %v2533_v12, %v3169_v1  ;;  %v2568_v38 = vld [vmem:[%s3164_s28 + $0x38] sm:$0xff]   ;;  %s2504_s17 = sshll.u32 (!%p2390_p8), %s2391_s8, 3  ;;  %v2394_v12 = vld [vmem:[%s3571_s2] ss:$0 sm:$0xff] (!%p2390_p8) }
  0x1b   : > { %v400_v21 = vmul.f32 %v2536_v13, %v3169_v1  ;;  %v401_v22 = vmul.f32 %v2537_v14, %v3169_v1  ;;  %v417_v23 = vadd.f32 %v3183_v10, %v394_v15  ;;  %v418_v24 = vadd.f32 %v3183_v10, %v395_v16  ;;  %s473_s19 = scalar_lea.vmem (!%p2390_p8), %s3149_s12, %s2504_s17  ;;  %v2395_v15 = vld [vmem:[%s3572_s3] ss:$0 sm:$0xff] (!%p2390_p8) }
  0x1c   : > { %v419_v25 = vadd.f32 %v3183_v10, %v396_v17  ;;  %v420_v26 = vadd.f32 %v3183_v10, %v397_v18  ;;  %v421_v27 = vadd.f32 %v3183_v10, %v398_v19  ;;  %v422_v28 = vadd.f32 %v3183_v10, %v399_v20 }
  0x1d   : > { %v423_v29 = vadd.f32 %v3183_v10, %v400_v21  ;;  %v424_v30 = vadd.f32 %v3183_v10, %v401_v22  ;;  %v433_v33 = vmax.f32 %v417_v23, 0.0  ;;  %v434_v34 = vmax.f32 %v418_v24, 0.0 }
  0x1e   : > { %v435_v35 = vmax.f32 %v419_v25, 0.0  ;;  %v436_v36 = vmax.f32 %v420_v26, 0.0  ;;  %v437_v39 = vmax.f32 %v421_v27, 0.0  ;;  %v438_v40 = vmax.f32 %v422_v28, 0.0 }
  0x1f   : > { %v439_v41 = vmax.f32 %v423_v29, 0.0  ;;  %v440_v42 = vmax.f32 %v424_v30, 0.0  ;;  %450 = vst.msk [vmem:[#allocation2 + $0x19] sm:$0xff] %vm320_vm0, %v433_v33  ;;  %451 = vst.msk [vmem:[#allocation2 + $0x21] sm:$0xff] %vm320_vm0, %v434_v34  ;;  %v2540_v43 = vunpack.c.l.bf16 %v2565_v31  ;;  %v2541_v44 = vunpack.c.h.bf16 %v2565_v31 }
  0x20   : > { %452 = vst.msk [vmem:[#allocation2 + $0x31] sm:$0xff] %vm320_vm0, %v435_v35  ;;  %453 = vst.msk [vmem:[#allocation2 + $0x39] sm:$0xff] %vm320_vm0, %v436_v36  ;;  %v2544_v45 = vunpack.c.l.bf16 %v2566_v32  ;;  %v2545_v46 = vunpack.c.h.bf16 %v2566_v32  ;;  %v2548_v47 = vunpack.c.l.bf16 %v2567_v37  ;;  %v2549_v48 = vunpack.c.h.bf16 %v2567_v37 }
  0x21   : > { %454 = vst.msk [vmem:[#allocation2 + $0x49] sm:$0xff] %vm320_vm0, %v437_v39  ;;  %455 = vst.msk [vmem:[#allocation2 + $0x51] sm:$0xff] %vm320_vm0, %v438_v40  ;;  %v2552_v49 = vunpack.c.l.bf16 %v2568_v38  ;;  %v2553_v50 = vunpack.c.h.bf16 %v2568_v38  ;;  %v402_v51 = vmul.f32 %v2540_v43, %v3169_v1  ;;  %v403_v52 = vmul.f32 %v2541_v44, %v3169_v1 }
  0x22   : > { %456 = vst.msk [vmem:[#allocation2 + $0x61] sm:$0xff] %vm320_vm0, %v439_v41  ;;  %457 = vst.msk [vmem:[#allocation2 + $0x69] sm:$0xff] %vm320_vm0, %v440_v42  ;;  %v404_v53 = vmul.f32 %v2544_v45, %v3169_v1  ;;  %v405_v54 = vmul.f32 %v2545_v46, %v3169_v1  ;;  %v406_v55 = vmul.f32 %v2548_v47, %v3169_v1 }
  0x23   : > { %v407_v56 = vmul.f32 %v2549_v48, %v3169_v1  ;;  %v408_v57 = vmul.f32 %v2552_v49, %v3169_v1  ;;  %v409_v58 = vmul.f32 %v2553_v50, %v3169_v1  ;;  %v425_v59 = vadd.f32 %v3183_v10, %v402_v51 }
  0x24   : > { %v426_v60 = vadd.f32 %v3183_v10, %v403_v52  ;;  %v427_v61 = vadd.f32 %v3183_v10, %v404_v53  ;;  %v428_v62 = vadd.f32 %v3183_v10, %v405_v54  ;;  %v429_v63 = vadd.f32 %v3183_v10, %v406_v55 }
  0x25   : > { %v430_v0 = vadd.f32 %v3183_v10, %v407_v56  ;;  %v431_v2 = vadd.f32 %v3183_v10, %v408_v57  ;;  %v432_v3 = vadd.f32 %v3183_v10, %v409_v58  ;;  %v441_v4 = vmax.f32 %v425_v59, 0.0  ;;  %469 = sbr.rel (%p2390_p8) target bundleno = 49 (0x31), region = 40  ;;  %v2555_v10 = vld [vmem:[%s473_s19] sm:$0xff] (!%p2390_p8)  }
  0x26   : > { %v442_v5 = vmax.f32 %v426_v60, 0.0  ;;  %v443_v6 = vmax.f32 %v427_v61, 0.0  ;;  %v444_v1 = vmax.f32 %v428_v62, 0.0  ;;  %v445_v7 = vmax.f32 %v429_v63, 0.0 }
  0x27   : > { %v446_v8 = vmax.f32 %v430_v0, 0.0  ;;  %v447_v9 = vmax.f32 %v431_v2, 0.0  ;;  %v448_v11 = vmax.f32 %v432_v3, 0.0  ;;  %458 = vst.msk [vmem:[#allocation2 + $0x79] sm:$0xff] %vm320_vm0, %v441_v4  ;;  %v2556_v13 = vunpack.c.l.bf16 (!%p2390_p8), %v2555_v10 }
  0x28   : > { %459 = vst.msk [vmem:[#allocation2 + $0x81] sm:$0xff] %vm320_vm0, %v442_v5  ;;  %460 = vst.msk [vmem:[#allocation2 + $0x91] sm:$0xff] %vm320_vm0, %v443_v6  ;;  %v2557_v14 = vunpack.c.h.bf16 (!%p2390_p8), %v2555_v10 }
  0x29   : > { %461 = vst.msk [vmem:[#allocation2 + $0x99] sm:$0xff] %vm320_vm0, %v444_v1  ;;  %462 = vst.msk [vmem:[#allocation2 + $0xa9] sm:$0xff] %vm320_vm0, %v445_v7  ;;  %v485_v16 = vmul.f32 (!%p2390_p8), %v2556_v13, %v2394_v12 }
  0x2a   : > { %463 = vst.msk [vmem:[#allocation2 + $0xb1] sm:$0xff] %vm320_vm0, %v446_v8  ;;  %464 = vst.msk [vmem:[#allocation2 + $0xc1] sm:$0xff] %vm320_vm0, %v447_v9  ;;  %v486_v17 = vmul.f32 (!%p2390_p8), %v2557_v14, %v2394_v12 }
  0x2b   : > { %465 = vst.msk [vmem:[#allocation2 + $0xc9] sm:$0xff] %vm320_vm0, %v448_v11  ;;  %v494_v18 = vadd.f32 (!%p2390_p8), %v2395_v15, %v485_v16 }
  0x2c   : > { %v495_v19 = vadd.f32 %v2395_v15, %v486_v17 }
  0x2d   : > { %v496_v20 = vmax.f32 %v494_v18, 0.0 }
  0x2e   : > { %v497_v21 = vmax.f32 %v495_v19, 0.0 }
  0x2f   : > { %498 = vst.msk [vmem:[#allocation2 + $0x1] sm:$0xff] %vm320_vm0, %v496_v20 }
  0x30   : > { %499 = vst.msk [vmem:[#allocation2 + $0x9] sm:$0xff] %vm320_vm0, %v497_v21 }
  0x31 PF: > { %s500_s12 = sadd.s32 8, %s3140_s30 }
  0x32   : > { %p2396_p9 = scmp.ge.s32.totalorder %s500_s12, 16 }
  0x33   : > { %v2569_v22 = vld [vmem:[%s3164_s28 + $0x40] sm:$0xff] (!%p2396_p9)  }
  0x34   : > { %504 = sbr.rel (%p2396_p9) target bundleno = 61 (0x3d), region = 44  ;;  %v2401_v23 = vld [vmem:[%s3571_s2] ss:$0 sm:$0xff] (!%p2396_p9)  ;;  %v2560_v24 = vunpack.c.l.bf16 (!%p2396_p9), %v2569_v22  ;;  %v2561_v25 = vunpack.c.h.bf16 (!%p2396_p9), %v2569_v22 }
  0x35   : > { %v2402_v26 = vld [vmem:[%s3572_s3] ss:$0 sm:$0xff] (!%p2396_p9) }
  0x36   : > { %v519_v27 = vmul.f32 (!%p2396_p9), %v2560_v24, %v2401_v23  ;;  %v520_v28 = vmul.f32 (!%p2396_p9), %v2561_v25, %v2401_v23 }
  0x38   : > { %v528_v29 = vadd.f32 (!%p2396_p9), %v2402_v26, %v519_v27  ;;  %v529_v30 = vadd.f32 (!%p2396_p9), %v2402_v26, %v520_v28 }
  0x3a   : > { %v530_v31 = vmax.f32 (!%p2396_p9), %v528_v29, 0.0  ;;  %v531_v32 = vmax.f32 (!%p2396_p9), %v529_v30, 0.0 }
  0x3c   : > { %533 = vst.msk [vmem:[#allocation2 + $0xd9] sm:$0xff] %vm320_vm0, %v530_v31  ;;  %534 = vst.msk [vmem:[#allocation2 + $0xe1] sm:$0xff] %vm320_vm0, %v531_v32 }
  0x3d PF: > { %v2403_v33 = vld [vmem:[%s3570_s1 + $0x2] sm:$0x3]  ;;  %vm611_vm2 = vcmask 1041408   ;;  %v3264_v34 = vld [vmem:[%s3570_s1 + $0x8] sm:$0x3]  ;;  %v561_v35 = vld [vmem:[#allocation2 + $0x31] sm:$0xff] }
  0x3e   : > { %2943 = vmatprep.subr.msk.bf16.mxu1 %vm611_vm2, %v2403_v33  ;;  %2947 = vmatprep.subr.msk.bf16.mxu0 %vm611_vm2, %v3264_v34  ;;  %v613_v36 = vsel %vm611_vm2, %v2403_v33, 0  ;;  %v3272_v37 = vsel %vm611_vm2, %v3264_v34, 0  ;;  %v562_v38 = vld [vmem:[#allocation2 + $0x39] sm:$0xff]  ;;  %v1169_v40 = vld [vmem:[#allocation2 + $0x21] sm:$0xff]  ;;  %v563_v43 = vld [vmem:[#allocation2 + $0x49] sm:$0xff]  ;;  %vm2170_vm3 = vcmask 27648  }
  0x3f   : > { %v1168_v39 = vld [vmem:[#allocation2 + $0x19] sm:$0xff]  ;;  %2652 = vmatpush3.bf16.msra.mxu1 %v613_v36  ;;  %2724 = vmatpush3.bf16.msra.mxu0 %v3272_v37  ;;  %v3275_v41 = vpack.c.bf16 %v562_v38, %v561_v35  ;;  %v564_v44 = vld [vmem:[#allocation2 + $0x51] sm:$0xff]  ;;  %v2447_v47 = vld [vmem:[%s3570_s1 + $0xa] sm:$0x3] }
  0x40   : > { %v3277_v42 = vpack.c.bf16 %v1169_v40, %v1168_v39  ;;  %v560_v45 = vld [vmem:[%s3570_s1] sm:$0x3]  ;;  %v3282_v46 = vpack.c.bf16 %v564_v44, %v563_v43  ;;  %v566_v50 = vld [vmem:[#allocation2 + $0x69] sm:$0xff]  ;;  %v1385_v51 = vsel %vm611_vm2, %v2447_v47, 0  ;;  %2949 = vmatprep.subr.msk.bf16.mxu0 %vm611_vm2, %v2447_v47  ;;  %v569_v55 = vld [vmem:[#allocation2 + $0x91] sm:$0xff] }
  0x41   : > { %2944 = vmatprep.subr.msk.bf16.mxu1 %vm611_vm2, %v560_v45  ;;  %v737_v48 = vsel %vm611_vm2, %v560_v45, 0  ;;  %v565_v49 = vld [vmem:[#allocation2 + $0x61] sm:$0xff]  ;;  %2653 = vmatprep.mubr.msk.bf16.mxu1 %vm320_vm0, %v3275_v41  ;;  %v567_v53 = vld [vmem:[#allocation2 + $0x79] sm:$0xff]  ;;  %v2456_v59 = vld [vmem:[%s3570_s1 + $0xc] sm:$0x3] }
  0x42   : > { %2725 = vmatprep.mubr.msk.bf16.mxu0 %vm320_vm0, %v3277_v42  ;;  %v3294_v52 = vpack.c.bf16 %v566_v50, %v565_v49  ;;  %2654 = vmatmul.mubr.msk.bf16.vlgmr.msra.gmra.mrb[0].mxu1 %vm320_vm0, %v3282_v46  ;;  %v568_v54 = vld [vmem:[#allocation2 + $0x81] sm:$0xff]  ;;  %v570_v56 = vld [vmem:[#allocation2 + $0x99] sm:$0xff]  ;;  %v571_v0 = vld [vmem:[#allocation2 + $0xa9] sm:$0xff]  ;;  %v1551_v10 = vsel %vm611_vm2, %v2456_v59, 0 }
  0x43   : > { %2726 = vmatmul.mubr.msk.bf16.vlgmr.msra.gmra.mrb[0].mxu0 %vm320_vm0, %v3275_v41  ;;  %2670 = vmatpush3.bf16.msra.mxu1 %v737_v48  ;;  %v1334_v57 = vld [vmem:[#allocation2 + $0x18] sm:$0xff]  ;;  %v1335_v58 = vld [vmem:[#allocation2 + $0x20] sm:$0xff]  ;;  %v3309_v60 = vpack.c.bf16 %v568_v54, %v567_v53  ;;  %v3311_v61 = vpack.c.bf16 %v570_v56, %v569_v55  ;;  %v1336_v3 = vld [vmem:[#allocation2 + $0x30] sm:$0xff] }
  0x44   : > { %2742 = vmatpush3.bf16.msra.mxu0 %v1385_v51  ;;  %2657 = vmatprep.mubr.msk.bf16.mxu1 %vm320_vm0, %v3294_v52  ;;  %v3313_v62 = vpack.c.bf16 %v1335_v58, %v1334_v57  ;;  %v2420_v63 = vld [vmem:[%s3570_s1 + $0x4] sm:$0x3]  ;;  %v572_v2 = vld [vmem:[#allocation2 + $0xb1] sm:$0xff]  ;;  %v574_v6 = vld [vmem:[#allocation2 + $0xc9] sm:$0xff] }
  0x45   : > { %2729 = vmatprep.mubr.msk.bf16.mxu0 %vm320_vm0, %v3282_v46  ;;  %2950 = vmatprep.subr.msk.bf16.mxu0 %vm611_vm2, %v2456_v59  ;;  %v1337_v4 = vld [vmem:[#allocation2 + $0x38] sm:$0xff]  ;;  %v573_v5 = vld [vmem:[#allocation2 + $0xc1] sm:$0xff]  ;;  %v1339_v7 = vld [vmem:[#allocation2 + $0x50] sm:$0xff]  ;;  %v3327_v8 = vpack.c.bf16 %v572_v2, %v571_v0  ;;  %v887_v39 = vsel %vm611_vm2, %v2420_v63, 0 }
  0x46   : > { %2945 = vmatprep.subr.msk.bf16.mxu1 %vm611_vm2, %v2420_v63  ;;  %v1338_v1 = vld [vmem:[#allocation2 + $0x48] sm:$0xff]  ;;  %v3329_v9 = vpack.c.bf16 %v1337_v4, %v1336_v3  ;;  %v3331_v11 = vpack.c.bf16 %v574_v6, %v573_v5  ;;  %v575_v14 = vld [vmem:[#allocation2 + $0xd9] sm:$0xff]  ;;  %v1344_v28 = vld [vmem:[#allocation2 + $0x90] sm:$0xff] }
  0x47   : > { %v3334_v12 = vpack.c.bf16 %v1339_v7, %v1338_v1  ;;  %v3339_v13 = vld [vmem:[%s3570_s1 + $0xe] sm:$0x3]  ;;  %v576_v15 = vld [vmem:[#allocation2 + $0xe1] sm:$0xff]  ;;  %v536_v18 = vld [vmem:[#allocation2 + $0x32] sm:$0xff] }
  0x48   : > { %v1340_v16 = vld [vmem:[#allocation2 + $0x60] sm:$0xff]  ;;  %v1341_v17 = vld [vmem:[#allocation2 + $0x68] sm:$0xff]  ;;  %v1342_v20 = vld [vmem:[#allocation2 + $0x78] sm:$0xff]  ;;  %v584_v22 = vpack.c.bf16 %v576_v15, %v575_v14  ;;  %v1717_v1 = vsel %vm611_vm2, %v3339_v13, 0 }
  0x49   : > { %v537_v19 = vld [vmem:[#allocation2 + $0x3a] sm:$0xff]  ;;  %v3351_v23 = vpack.c.bf16 %v1341_v17, %v1340_v16  ;;  %v538_v26 = vld [vmem:[#allocation2 + $0x4a] sm:$0xff]  ;;  %v539_v27 = vld [vmem:[#allocation2 + $0x52] sm:$0xff] }
  0x4a   : > { %2658 = vmatmul.mubr.msk.bf16.gmra.mrb[4].mxu1 %vm320_vm0, %v3309_v60  ;;  %v1343_v21 = vld [vmem:[#allocation2 + $0x80] sm:$0xff]  ;;  %v3353_v24 = vpack.c.bf16 %v537_v19, %v536_v18  ;;  %v1345_v29 = vld [vmem:[#allocation2 + $0x98] sm:$0xff]  ;;  %v541_v31 = vld [vmem:[#allocation2 + $0x6a] sm:$0xff]  ;;  %v3364_v35 = vpack.c.bf16 %v539_v27, %v538_v26 }
  0x4b   : > { %2730 = vmatmul.mubr.msk.bf16.gmra.mrb[4].mxu0 %vm320_vm0, %v3294_v52  ;;  %2661 = vmatprep.mubr.msk.bf16.mxu1 %vm320_vm0, %v3311_v61  ;;  %v3355_v25 = vpack.c.bf16 %v1343_v21, %v1342_v20  ;;  %v540_v30 = vld [vmem:[#allocation2 + $0x62] sm:$0xff]  ;;  %v1347_v33 = vld [vmem:[#allocation2 + $0xb0] sm:$0xff]  ;;  %v3366_v36 = vpack.c.bf16 %v1345_v29, %v1344_v28  ;;  %v542_v44 = vld [vmem:[#allocation2 + $0x7a] sm:$0xff] }
  0x4c   : > { %2743 = vmatprep.mubr.msk.bf16.mxu0 %vm320_vm0, %v3313_v62  ;;  %v1346_v32 = vld [vmem:[#allocation2 + $0xa8] sm:$0xff]  ;;  %v3368_v38 = vpack.c.bf16 %v541_v31, %v540_v30  ;;  %v2429_v43 = vld [vmem:[%s3570_s1 + $0x6] sm:$0x3]  ;;  %v544_v49 = vld [vmem:[#allocation2 + $0x92] sm:$0xff] }
  0x4d   : > { %v3371_v40 = vpack.c.bf16 %v1347_v33, %v1346_v32  ;;  %v543_v45 = vld [vmem:[#allocation2 + $0x82] sm:$0xff]  ;;  %v545_v50 = vld [vmem:[#allocation2 + $0x9a] sm:$0xff]  ;;  %v1501_v53 = vld [vmem:[#allocation2 + $0xa] sm:$0xff] }
  0x4e   : > { %v1348_v47 = vld [vmem:[#allocation2 + $0xc0] sm:$0xff]  ;;  %v1349_v48 = vld [vmem:[#allocation2 + $0xc8] sm:$0xff]  ;;  %v3385_v54 = vpack.c.bf16 %v543_v45, %v542_v44  ;;  %v3387_v56 = vpack.c.bf16 %v545_v50, %v544_v49  ;;  %v547_v59 = vld [vmem:[#allocation2 + $0xb2] sm:$0xff] }
  0x4f   : > { %v1500_v51 = vld [vmem:[#allocation2 + $0x2] sm:$0xff]  ;;  %v1357_v55 = vpack.c.bf16 %v1349_v48, %v1348_v47  ;;  %v546_v58 = vld [vmem:[#allocation2 + $0xaa] sm:$0xff]  ;;  %v1502_v63 = vld [vmem:[#allocation2 + $0x1a] sm:$0xff] }
  0x50   : > { %v1516_v57 = vpack.c.bf16 %v1501_v53, %v1500_v51  ;;  %v1503_v0 = vld [vmem:[#allocation2 + $0x22] sm:$0xff]  ;;  %v549_v3 = vld [vmem:[#allocation2 + $0xca] sm:$0xff]  ;;  %v557_v4 = vpack.c.bf16 %v547_v59, %v546_v58 }
  0x51   : > { %v548_v2 = vld [vmem:[#allocation2 + $0xc2] sm:$0xff]  ;;  %v1517_v5 = vpack.c.bf16 %v1503_v0, %v1502_v63  ;;  %v2474_v7 = vld [vmem:[%s3570_s1 + $0x10] sm:$0x3] }
  0x52   : > { %2662 = vmatmul.mubr.msk.bf16.gmra.mrb[8].mxu1 %vm320_vm0, %v3327_v8  ;;  %v558_v6 = vpack.c.bf16 %v549_v3, %v548_v2  ;;  %v551_v14 = vld [vmem:[#allocation2 + $0xe2] sm:$0xff]  ;;  %v1883_v19 = vsel %vm611_vm2, %v2474_v7, 0 }
  0x53   : > { %2744 = vmatmul.mubr.msk.bf16.vlgmr.msra.gmra.mrb[0].mxu0 %vm320_vm0, %v3329_v9  ;;  %2665 = vmatprep.mubr.msk.bf16.mxu1 %vm320_vm0, %v3331_v11  ;;  %v1666_v16 = vld [vmem:[#allocation2 + $0x1] sm:$0xff]  ;;  %v1667_v17 = vld [vmem:[#allocation2 + $0x9] sm:$0xff] }
  0x54   : > { %2760 = vmatpush3.bf16.msra.mxu0 %v1551_v10  ;;  %2747 = vmatprep.mubr.msk.bf16.mxu0 %vm320_vm0, %v3334_v12  ;;  %v550_v10 = vld [vmem:[#allocation2 + $0xda] sm:$0xff]  ;;  %v1682_v18 = vpack.c.bf16 %v1667_v17, %v1666_v16 }
  0x55   : > { %2951 = vmatprep.subr.msk.bf16.mxu0 %vm611_vm2, %v3339_v13  ;;  %v559_v15 = vpack.c.bf16 %v551_v14, %v550_v10  ;;  %v1053_v13 = vsel %vm611_vm2, %v2429_v43, 0  ;;  %v851_v20 = vld [vmem:[#allocation2 + $0xe0] sm:$0xff] }
  0x5a   : > { %2666 = vmatmul.mubr.msk.bf16.gmra.mrb[12].mxu1 %vm320_vm0, %v584_v22 }
  0x5b   : > { %2748 = vmatmul.mubr.msk.bf16.gmra.mrb[4].mxu0 %vm320_vm0, %v3351_v23  ;;  %2671 = vmatprep.mubr.msk.bf16.mxu1 %vm320_vm0, %v3353_v24 }
  0x5c   : > { %2751 = vmatprep.mubr.msk.bf16.mxu0 %vm320_vm0, %v3355_v25 }
  0x62   : > { %2672 = vmatmul.mubr.msk.bf16.vlgmr.msra.gmra.mrb[0].mxu1 %vm320_vm0, %v3364_v35 }
  0x63   : > { %2752 = vmatmul.mubr.msk.bf16.gmra.mrb[8].mxu0 %vm320_vm0, %v3366_v36  ;;  %2688 = vmatpush3.bf16.msra.mxu1 %v887_v39 }
  0x64   : > { %2675 = vmatprep.mubr.msk.bf16.mxu1 %vm320_vm0, %v3368_v38  ;;  %2755 = vmatprep.mubr.msk.bf16.mxu0 %vm320_vm0, %v3371_v40 }
  0x65   : > { %2946 = vmatprep.subr.msk.bf16.mxu1 %vm611_vm2, %v2429_v43 }
  0x6a   : > { %2676 = vmatmul.mubr.msk.bf16.gmra.mrb[4].mxu1 %vm320_vm0, %v3385_v54 }
  0x6b   : > { %2756 = vmatmul.mubr.msk.bf16.gmra.mrb[12].mxu0 %vm320_vm0, %v1357_v55  ;;  %2679 = vmatprep.mubr.msk.bf16.mxu1 %vm320_vm0, %v3387_v56 }
  0x6c   : > { %2761 = vmatprep.mubr.msk.bf16.mxu0 %vm320_vm0, %v1516_v57 }
  0x72   : > { %2680 = vmatmul.mubr.msk.bf16.gmra.mrb[8].mxu1 %vm320_vm0, %v557_v4 }
  0x73   : > { %2762 = vmatmul.mubr.msk.bf16.vlgmr.msra.gmra.mrb[0].mxu0 %vm320_vm0, %v1517_v5  ;;  %2683 = vmatprep.mubr.msk.bf16.mxu1 %vm320_vm0, %v558_v6 }
  0x74   : > { %2778 = vmatpush3.bf16.msra.mxu0 %v1717_v1  ;;  %2765 = vmatprep.mubr.msk.bf16.mxu0 %vm320_vm0, %v3353_v24 }
  0x75   : > { %2952 = vmatprep.subr.msk.bf16.mxu0 %vm611_vm2, %v2474_v7 }
  0x7a   : > { %2684 = vmatmul.mubr.msk.bf16.gmra.mrb[12].mxu1 %vm320_vm0, %v559_v15 }
  0x7b   : > { %2766 = vmatmul.mubr.msk.bf16.gmra.mrb[4].mxu0 %vm320_vm0, %v3364_v35  ;;  %2689 = vmatprep.mubr.msk.bf16.mxu1 %vm320_vm0, %v3329_v9 }
  0x7c   : > { %2769 = vmatprep.mubr.msk.bf16.mxu0 %vm320_vm0, %v3368_v38 }
  0x82   : > { %2690 = vmatmul.mubr.msk.bf16.vlgmr.msra.gmra.mrb[0].mxu1 %vm320_vm0, %v3334_v12 }
  0x83   : > { %2770 = vmatmul.mubr.msk.bf16.gmra.mrb[8].mxu0 %vm320_vm0, %v3385_v54  ;;  %2706 = vmatpush3.bf16.msra.mxu1 %v1053_v13 }
  0x84   : > { %2693 = vmatprep.mubr.msk.bf16.mxu1 %vm320_vm0, %v3351_v23  ;;  %2773 = vmatprep.mubr.msk.bf16.mxu0 %vm320_vm0, %v3387_v56 }
  0x85   : > { %2948 = vmatprep.subr.msk.bf16.mxu1 %vm611_vm2, %v3264_v34  ;;  %v850_v34 = vld [vmem:[#allocation2 + $0xd8] sm:$0xff] }
  0x86   : > { %v859_v21 = vpack.c.bf16 %v851_v20, %v850_v34 }
  0x8a   : > { %2694 = vmatmul.mubr.msk.bf16.gmra.mrb[4].mxu1 %vm320_vm0, %v3355_v25 }
  0x8b   : > { %2774 = vmatmul.mubr.msk.bf16.gmra.mrb[12].mxu0 %vm320_vm0, %v557_v4  ;;  %2697 = vmatprep.mubr.msk.bf16.mxu1 %vm320_vm0, %v3366_v36 }
  0x8c   : > { %2779 = vmatprep.mubr.msk.bf16.mxu0 %vm320_vm0, %v1682_v18 }
  0x92   : > { %2698 = vmatmul.mubr.msk.bf16.gmra.mrb[8].mxu1 %vm320_vm0, %v3371_v40 }
  0x93   : > { %2780 = vmatmul.mubr.msk.bf16.vlgmr.msra.gmra.mrb[0].mxu0 %vm320_vm0, %v3277_v42  ;;  %2701 = vmatprep.mubr.msk.bf16.mxu1 %vm320_vm0, %v1357_v55  ;;  %v1833_v42 = vld [vmem:[#allocation2 + $0x8] sm:$0xff] }
  0x94   : > { %2796 = vmatpush3.bf16.msra.mxu0 %v1883_v19  ;;  %2783 = vmatprep.mubr.msk.bf16.mxu0 %vm320_vm0, %v3275_v41  ;;  %v1832_v41 = vld [vmem:[#allocation2] sm:$0xff] }
  0x9a   : > { %2702 = vmatmul.mubr.msk.bf16.gmra.mrb[12].mxu1 %vm320_vm0, %v859_v21 }
  0x9b   : > { %2784 = vmatmul.mubr.msk.bf16.gmra.mrb[4].mxu0 %vm320_vm0, %v3282_v46  ;;  %2707 = vmatprep.mubr.msk.bf16.mxu1 %vm320_vm0, %v1517_v5  ;;  %v1848_v46 = vpack.c.bf16 %v1833_v42, %v1832_v41 }
  0x9c   : > { %2787 = vmatprep.mubr.msk.bf16.mxu0 %vm320_vm0, %v3294_v52 }
  0xa2   : > { %2708 = vmatmul.mubr.msk.bf16.vlgmr.msra.gmra.mrb[0].mxu1 %vm320_vm0, %v3353_v24 }
  0xa3   : > { %2788 = vmatmul.mubr.msk.bf16.gmra.mrb[8].mxu0 %vm320_vm0, %v3309_v60  ;;  %2814 = vmatpush3.bf16.msra.mxu1 %v3272_v37 }
  0xa4   : > { %2711 = vmatprep.mubr.msk.bf16.mxu1 %vm320_vm0, %v3364_v35  ;;  %2791 = vmatprep.mubr.msk.bf16.mxu0 %vm320_vm0, %v3311_v61 }
  0xaa   : > { %2712 = vmatmul.mubr.msk.bf16.gmra.mrb[4].mxu1 %vm320_vm0, %v3368_v38 }
  0xab   : > { %2792 = vmatmul.mubr.msk.bf16.gmra.mrb[12].mxu0 %vm320_vm0, %v3327_v8  ;;  %2715 = vmatprep.mubr.msk.bf16.mxu1 %vm320_vm0, %v3385_v54 }
  0xac   : > { %2797 = vmatprep.mubr.msk.bf16.mxu0 %vm320_vm0, %v1848_v46 }
  0xb2   : > { %2716 = vmatmul.mubr.msk.bf16.gmra.mrb[8].mxu1 %vm320_vm0, %v3387_v56 }
  0xb3   : > { %2798 = vmatmul.mubr.msk.bf16.vlgmr.msra.gmra.mrb[0].mxu0 %vm320_vm0, %v3313_v62  ;;  %2719 = vmatprep.mubr.msk.bf16.mxu1 %vm320_vm0, %v557_v4 }
  0xb4   : > { %2801 = vmatprep.mubr.msk.bf16.mxu0 %vm320_vm0, %v3329_v9 }
  0xba   : > { %2720 = vmatmul.mubr.msk.bf16.gmra.mrb[12].mxu1 %vm320_vm0, %v558_v6 }
  0xbb   : > { %2802 = vmatmul.mubr.msk.bf16.gmra.mrb[4].mxu0 %vm320_vm0, %v3334_v12  ;;  %2733 = vmatprep.mubr.msk.bf16.mxu1 %vm320_vm0, %v3309_v60 }
  0xbc   : > { %2805 = vmatprep.mubr.msk.bf16.mxu0 %vm320_vm0, %v3351_v23 }
  0xc2   : > { %2734 = vmatmul.mubr.msk.bf16.vlgmr.msra.gmra.mrb[8].mxu1 %vm320_vm0, %v3311_v61 }
  0xc3   : > { %2806 = vmatmul.mubr.msk.bf16.gmra.mrb[8].mxu0 %vm320_vm0, %v3355_v25  ;;  %2737 = vmatprep.mubr.msk.bf16.mxu1 %vm320_vm0, %v3327_v8 }
  0xc4   : > { %2809 = vmatprep.mubr.msk.bf16.mxu0 %vm320_vm0, %v3366_v36 }
  0xca   : > { %2738 = vmatmul.mubr.msk.bf16.gmra.mrb[12].mxu1 %vm320_vm0, %v3331_v11 }
  0xcb   : > { %2810 = vmatmul.mubr.msk.bf16.gmra.mrb[12].mxu0 %vm320_vm0, %v3371_v40 }
 0x175   : > { %v2709_v37 = vpop.f32.mrb[0].mxu1 }
 0x176   : > { %v1089_v52 = vpop.f32.mrb[1].mxu1 }
 0x177   : > { %v2710_v60 = vpop.f32.mrb[2].mxu1 }
 0x178   : > { %v1092_v62 = vpop.f32.mrb[3].mxu1 }
 0x17d   : > { %v2713_v61 = vpop.f32.mrb[4].mxu1 }
 0x17e   : > { %v1105_v9 = vpop.f32.mrb[5].mxu1 }
 0x17f   : > { %v2714_v12 = vpop.f32.mrb[6].mxu1 }
 0x180   : > { %v1108_v22 = vpop.f32.mrb[7].mxu1 }
 0x186   : > { %v2799_v8 = vpop.f32.mrb[0].mxu0 }
 0x187   : > { %v2815_v23 = vadd.f32 %v2799_v8, %v2709_v37  ;;  %v1919_v24 = vpop.f32.mrb[1].mxu0 }
 0x188   : > { %v2816_v25 = vadd.f32 %v1919_v24, %v1089_v52  ;;  %v2800_v11 = vpop.f32.mrb[2].mxu0 }
 0x189   : > { %v2508_v26 = vpack.c.bf16 %v2815_v23, %v2815_v23  ;;  %v2817_v27 = vadd.f32 %v2800_v11, %v2710_v60  ;;  %v1922_v28 = vpop.f32.mrb[3].mxu0 }
 0x18a   : > { %v2506_v29 = vpack.c.bf16 %v2816_v25, %v2816_v25  ;;  %v2818_v30 = vadd.f32 %v1922_v28, %v1092_v62 }
 0x18b   : > { %2173 = vst.msk [vmem:[%s3178_s13 + $0x8] sm:$0xf] %vm2170_vm3, %v2508_v26  ;;  %v1999_v31 = vpack.c.bf16 %v2817_v27, %v2815_v23  ;;  %v2509_v32 = vpack.c.bf16 %v2817_v27, %v2817_v27 }
 0x18c   : > { %2171 = vst.msk [vmem:[%s3178_s13] sm:$0xf] %vm2170_vm3, %v2506_v29  ;;  %v1998_v33 = vpack.c.bf16 %v2818_v30, %v2816_v25  ;;  %v2507_v35 = vpack.c.bf16 %v2818_v30, %v2818_v30 }
 0x18d   : > { %v2008_v36 = vunpack.c.l.bf16 %v1999_v31  ;;  %v2009_v38 = vunpack.c.h.bf16 %v1999_v31  ;;  %2174 = vst.msk [vmem:[%s3178_s13 + $0xc] sm:$0xf] %vm2170_vm3, %v2509_v32 }
 0x18e   : > { %v2006_v39 = vunpack.c.l.bf16 %v1998_v33  ;;  %v2007_v40 = vunpack.c.h.bf16 %v1998_v33  ;;  %2172 = vst.msk [vmem:[%s3178_s13 + $0x4] sm:$0xf] %vm2170_vm3, %v2507_v35  ;;  %v2803_v43 = vpop.f32.mrb[4].mxu0 }
 0x18f   : > { %v2025_v44 = vsel %vm320_vm0, %v2008_v36, 0.0  ;;  %v2062_v45 = vmul.f32 %v2008_v36, %v2008_v36  ;;  %v1935_v47 = vpop.f32.mrb[5].mxu0  ;;  %v2027_v54 = vsel %vm320_vm0, %v2009_v38, 0.0  ;;  %v2063_v55 = vmul.f32 %v2009_v38, %v2009_v38 }
 0x190   : > { %v2022_v48 = vsel %vm320_vm0, %v2006_v39, 0.0  ;;  %v2023_v49 = vsel %vm320_vm0, %v2007_v40, 0.0  ;;  %v2060_v50 = vmul.f32 %v2006_v39, %v2006_v39  ;;  %v2061_v51 = vmul.f32 %v2007_v40, %v2007_v40  ;;  %v2804_v53 = vpop.f32.mrb[6].mxu0 }
 0x191   : > { %v2024_v56 = vadd.f32 %v2023_v49, %v2022_v48  ;;  %v2819_v57 = vadd.f32 %v2803_v43, %v2713_v61  ;;  %v1938_v58 = vpop.f32.mrb[7].mxu0  ;;  %v2820_v0 = vadd.f32 %v1935_v47, %v1105_v9  ;;  %v2821_v2 = vadd.f32 %v2804_v53, %v2714_v12 }
 0x192   : > { %v2076_v59 = vsel %vm320_vm0, %v2060_v50, 0.0  ;;  %v2077_v63 = vsel %vm320_vm0, %v2061_v51, 0.0  ;;  %v2822_v6 = vadd.f32 %v1938_v58, %v1108_v22  ;;  %v2079_v1 = vsel %vm320_vm0, %v2062_v45, 0.0 }
 0x193   : > { %v2026_v3 = vadd.f32 %v2025_v44, %v2024_v56  ;;  %v2078_v4 = vadd.f32 %v2077_v63, %v2076_v59  ;;  %v2512_v5 = vpack.c.bf16 %v2819_v57, %v2819_v57  ;;  %v2510_v7 = vpack.c.bf16 %v2820_v0, %v2820_v0 }
 0x194   : > { %v2001_v10 = vpack.c.bf16 %v2821_v2, %v2819_v57  ;;  %v2513_v14 = vpack.c.bf16 %v2821_v2, %v2821_v2  ;;  %v2000_v13 = vpack.c.bf16 %v2822_v6, %v2820_v0  ;;  %v2511_v17 = vpack.c.bf16 %v2822_v6, %v2822_v6 }
 0x195   : > { %v2080_v15 = vadd.f32 %v2079_v1, %v2078_v4  ;;  %2177 = vst.msk [vmem:[%s3178_s13 + $0x18] sm:$0xf] %vm2170_vm3, %v2512_v5  ;;  %v2028_v16 = vadd.f32 %v2027_v54, %v2026_v3  ;;  %v2081_v18 = vsel %vm320_vm0, %v2063_v55, 0.0  ;;  %2175 = vst.msk [vmem:[%s3178_s13 + $0x10] sm:$0xf] %vm2170_vm3, %v2510_v7  ;;  %v2735_v34 = vpop.f32.mrb[8].mxu1 }
 0x196   : > { %v2012_v19 = vunpack.c.l.bf16 %v2001_v10  ;;  %2178 = vst.msk [vmem:[%s3178_s13 + $0x1c] sm:$0xf] %vm2170_vm3, %v2513_v14  ;;  %v2807_v20 = vpop.f32.mrb[8].mxu0  ;;  %v2010_v21 = vunpack.c.l.bf16 %v2000_v13  ;;  %v2011_v41 = vunpack.c.h.bf16 %v2000_v13  ;;  %2176 = vst.msk [vmem:[%s3178_s13 + $0x14] sm:$0xf] %vm2170_vm3, %v2511_v17  ;;  %v1287_v37 = vpop.f32.mrb[9].mxu1  ;;  %v2013_v60 = vunpack.c.h.bf16 %v2001_v10 }
 0x197   : > { %v2082_v42 = vadd.f32 %v2081_v18, %v2080_v15  ;;  %v2823_v46 = vadd.f32 %v2807_v20, %v2735_v34  ;;  %v1951_v52 = vpop.f32.mrb[9].mxu0  ;;  %v2736_v62 = vpop.f32.mrb[10].mxu1 }
 0x198   : > { %v2808_v61 = vpop.f32.mrb[10].mxu0  ;;  %v2029_v9 = vsel %vm320_vm0, %v2010_v21, 0.0  ;;  %v2064_v12 = vmul.f32 %v2010_v21, %v2010_v21  ;;  %v2065_v22 = vmul.f32 %v2011_v41, %v2011_v41  ;;  %v1290_v8 = vpop.f32.mrb[11].mxu1  ;;  %v2033_v24 = vsel %vm320_vm0, %v2012_v19, 0.0 }
 0x199   : > { %v1954_v23 = vpop.f32.mrb[11].mxu0  ;;  %v2066_v25 = vmul.f32 %v2012_v19, %v2012_v19  ;;  %v2030_v11 = vadd.f32 %v2029_v9, %v2028_v16  ;;  %v2516_v26 = vpack.c.bf16 %v2823_v46, %v2823_v46  ;;  %v2031_v27 = vsel %vm320_vm0, %v2011_v41, 0.0 }
 0x19a   : > { %v2083_v28 = vsel %vm320_vm0, %v2064_v12, 0.0  ;;  %v2824_v29 = vadd.f32 %v1951_v52, %v1287_v37  ;;  %v2825_v30 = vadd.f32 %v2808_v61, %v2736_v62  ;;  %v2067_v31 = vmul.f32 %v2013_v60, %v2013_v60 }
 0x19b   : > { %v2032_v32 = vadd.f32 %v2031_v27, %v2030_v11  ;;  %v2084_v33 = vadd.f32 %v2083_v28, %v2082_v42  ;;  %2181 = vst.msk [vmem:[%s3178_s13 + $0x28] sm:$0xf] %vm2170_vm3, %v2516_v26  ;;  %v2826_v35 = vadd.f32 %v1954_v23, %v1290_v8  ;;  %v2085_v36 = vsel %vm320_vm0, %v2065_v22, 0.0 }
 0x19c   : > { %v2514_v38 = vpack.c.bf16 %v2824_v29, %v2824_v29  ;;  %v2003_v39 = vpack.c.bf16 %v2825_v30, %v2823_v46  ;;  %v2517_v40 = vpack.c.bf16 %v2825_v30, %v2825_v30  ;;  %v2035_v50 = vsel %vm320_vm0, %v2013_v60, 0.0 }
 0x19d   : > { %v2034_v43 = vadd.f32 %v2033_v24, %v2032_v32  ;;  %v2086_v44 = vadd.f32 %v2085_v36, %v2084_v33  ;;  %v2002_v45 = vpack.c.bf16 %v2826_v35, %v2824_v29  ;;  %v2515_v47 = vpack.c.bf16 %v2826_v35, %v2826_v35  ;;  %v2739_v48 = vpop.f32.mrb[12].mxu1 }
 0x19e   : > { %v2811_v49 = vpop.f32.mrb[12].mxu0  ;;  %v2087_v51 = vsel %vm320_vm0, %v2066_v25, 0.0  ;;  %2179 = vst.msk [vmem:[%s3178_s13 + $0x20] sm:$0xf] %vm2170_vm3, %v2514_v38  ;;  %v2016_v53 = vunpack.c.l.bf16 %v2003_v39  ;;  %2182 = vst.msk [vmem:[%s3178_s13 + $0x2c] sm:$0xf] %vm2170_vm3, %v2517_v40  ;;  %v2017_v6 = vunpack.c.h.bf16 %v2003_v39 }
 0x19f   : > { %v2827_v54 = vadd.f32 %v2811_v49, %v2739_v48  ;;  %v1303_v55 = vpop.f32.mrb[13].mxu1  ;;  %v1967_v56 = vpop.f32.mrb[13].mxu0  ;;  %v2088_v57 = vadd.f32 %v2087_v51, %v2086_v44  ;;  %v2014_v58 = vunpack.c.l.bf16 %v2002_v45  ;;  %v2015_v59 = vunpack.c.h.bf16 %v2002_v45  ;;  %2180 = vst.msk [vmem:[%s3178_s13 + $0x24] sm:$0xf] %vm2170_vm3, %v2515_v47 }
 0x1a0   : > { %v2036_v63 = vadd.f32 %v2035_v50, %v2034_v43  ;;  %v2740_v0 = vpop.f32.mrb[14].mxu1  ;;  %v2812_v2 = vpop.f32.mrb[14].mxu0  ;;  %v2089_v3 = vsel %vm320_vm0, %v2067_v31, 0.0  ;;  %v2070_v14 = vmul.f32 %v2016_v53, %v2016_v53  ;;  %v2828_v19 = vadd.f32 %v1967_v56, %v1303_v55 }
 0x1a1   : > { %v1306_v4 = vpop.f32.mrb[15].mxu1  ;;  %v1970_v5 = vpop.f32.mrb[15].mxu0  ;;  %v2037_v1 = vsel %vm320_vm0, %v2014_v58, 0.0  ;;  %v2068_v7 = vmul.f32 %v2014_v58, %v2014_v58  ;;  %v2069_v10 = vmul.f32 %v2015_v59, %v2015_v59  ;;  %v2090_v13 = vadd.f32 %v2089_v3, %v2088_v57 }
 0x1a2   : > { %v2038_v15 = vadd.f32 %v2037_v1, %v2036_v63  ;;  %v2039_v16 = vsel %vm320_vm0, %v2015_v59, 0.0  ;;  %v2520_v18 = vpack.c.bf16 %v2827_v54, %v2827_v54  ;;  %v2829_v21 = vadd.f32 %v2812_v2, %v2740_v0 }
 0x1a3   : > { %v2091_v17 = vsel %vm320_vm0, %v2068_v7, 0.0  ;;  %v2830_v41 = vadd.f32 %v1970_v5, %v1306_v4  ;;  %v2041_v42 = vsel %vm320_vm0, %v2016_v53, 0.0  ;;  %v2071_v46 = vmul.f32 %v2017_v6, %v2017_v6 }
 0x1a4   : > { %v2040_v34 = vadd.f32 %v2039_v16, %v2038_v15  ;;  %v2092_v20 = vadd.f32 %v2091_v17, %v2090_v13  ;;  %v2093_v37 = vsel %vm320_vm0, %v2069_v10, 0.0  ;;  %2185 = vst.msk [vmem:[%s3178_s13 + $0x38] sm:$0xf] %vm2170_vm3, %v2520_v18  ;;  %v2518_v52 = vpack.c.bf16 %v2828_v19, %v2828_v19 }
 0x1a5   : > { %v2005_v61 = vpack.c.bf16 %v2829_v21, %v2827_v54  ;;  %v2521_v9 = vpack.c.bf16 %v2829_v21, %v2829_v21  ;;  %v2043_v12 = vsel %vm320_vm0, %v2017_v6, 0.0  ;;  %v2095_v22 = vsel %vm320_vm0, %v2070_v14, 0.0 }
 0x1a6   : > { %v2042_v60 = vadd.f32 %v2041_v42, %v2040_v34  ;;  %v2094_v62 = vadd.f32 %v2093_v37, %v2092_v20  ;;  %2183 = vst.msk [vmem:[%s3178_s13 + $0x30] sm:$0xf] %vm2170_vm3, %v2518_v52  ;;  %v2004_v8 = vpack.c.bf16 %v2830_v41, %v2828_v19  ;;  %v2519_v23 = vpack.c.bf16 %v2830_v41, %v2830_v41 }
 0x1a7   : > { %2186 = vst.msk [vmem:[%s3178_s13 + $0x3c] sm:$0xf] %vm2170_vm3, %v2521_v9  ;;  %v2020_v11 = vunpack.c.l.bf16 %v2005_v61  ;;  %v2097_v28 = vsel %vm320_vm0, %v2071_v46, 0.0  ;;  %v2021_v29 = vunpack.c.h.bf16 %v2005_v61  ;;  %v2187_v58 = vlaneseq }
 0x1a8   : > { %v2096_v24 = vadd.f32 %v2095_v22, %v2094_v62  ;;  %v2044_v25 = vadd.f32 %v2043_v12, %v2042_v60  ;;  %v2018_v26 = vunpack.c.l.bf16 %v2004_v8  ;;  %v2019_v27 = vunpack.c.h.bf16 %v2004_v8  ;;  %2184 = vst.msk [vmem:[%s3178_s13 + $0x34] sm:$0xf] %vm2170_vm3, %v2519_v23 }
 0x1a9   : > { %v2074_v36 = vmul.f32 %v2020_v11, %v2020_v11  ;;  %v2049_v44 = vsel %vm320_vm0, %v2020_v11, 0.0  ;;  %v2075_v45 = vmul.f32 %v2021_v29, %v2021_v29  ;;  %v2051_v50 = vsel %vm320_vm0, %v2021_v29, 0.0 }
 0x1aa   : > { %v2045_v30 = vsel %vm320_vm0, %v2018_v26, 0.0  ;;  %v2072_v31 = vmul.f32 %v2018_v26, %v2018_v26  ;;  %v2073_v32 = vmul.f32 %v2019_v27, %v2019_v27  ;;  %v2098_v35 = vadd.f32 %v2097_v28, %v2096_v24 }
 0x1ab   : > { %v2046_v33 = vadd.f32 %v2045_v30, %v2044_v25  ;;  %v2047_v38 = vsel %vm320_vm0, %v2019_v27, 0.0  ;;  %v2103_v51 = vsel %vm320_vm0, %v2074_v36, 0.0  ;;  %v2105_v55 = vsel %vm320_vm0, %v2075_v45, 0.0 }
 0x1ac   : > { %v2099_v39 = vsel %vm320_vm0, %v2072_v31, 0.0  ;;  %v2101_v47 = vsel %vm320_vm0, %v2073_v32, 0.0  ;;  %v2188_v3 = vshrl.u32 %v2187_v58, 7 }
 0x1ad   : > { %v2048_v40 = vadd.f32 %v2047_v38, %v2046_v33  ;;  %v2100_v43 = vadd.f32 %v2099_v39, %v2098_v35 }
 0x1ae   : > { %vm2189_vm4 = vcmp.eq.s32.totalorder %v2188_v3, 0 }
 0x1af   : > { %v2050_v48 = vadd.f32 %v2049_v44, %v2048_v40  ;;  %v2102_v49 = vadd.f32 %v2101_v47, %v2100_v43 }
 0x1b1   : > { %v2052_v53 = vadd.f32 %v2051_v50, %v2050_v48  ;;  %v2104_v54 = vadd.f32 %v2103_v51, %v2102_v49 }
 0x1b3   : > { %v2053_v56 = vrot.slane %v2052_v53, 4  ;;  %v2106_v57 = vadd.f32 %v2105_v55, %v2104_v54 }
 0x1b5   : > { %v2054_v59 = vadd.f32 %v2053_v56, %v2052_v53  ;;  %v2107_v63 = vrot.slane %v2106_v57, 4 }
 0x1b7   : > { %v2055_v0 = vrot.slane %v2054_v59, 2  ;;  %v2108_v2 = vadd.f32 %v2107_v63, %v2106_v57 }
 0x1b9   : > { %v2056_v4 = vadd.f32 %v2055_v0, %v2054_v59  ;;  %v2109_v5 = vrot.slane %v2108_v2, 2 }
 0x1bb   : > { %v2057_v6 = vrot.slane %v2056_v4, 1  ;;  %v2110_v1 = vadd.f32 %v2109_v5, %v2108_v2 }
 0x1bd   : > { %v2058_v7 = vadd.f32 %v2057_v6, %v2056_v4  ;;  %v2111_v10 = vrot.slane %v2110_v1, 1 }
 0x1bf   : > { %v2112_v14 = vadd.f32 %v2111_v10, %v2110_v1  ;;  %v2190_v15 = vsel %vm2189_vm4, %v2058_v7, 0.0 }
 0x1c0   : > { %2191 = vst.msk [vmem:[%s3154_s15] sm:$0xff] %vm320_vm0, %v2190_v15 }
 0x1c1   : > { %v2192_v13 = vsel %vm2189_vm4, %v2112_v14, 0.0 }
 0x1c2   : > { %2193 = vst.msk [vmem:[%s3159_s18] sm:$0xff] %vm320_vm0, %v2192_v13 }
 0x1c3 PF: > { %s17_s25 = sadd.s32 1, %s3032_s25   ;;  %s3576_s21 = smov %s3024_s23 }
 0x1c4   : > { %p14_p10 = scmp.ge.s32.totalorder %s17_s25, 6   ;;  %s3577_s22 = smov %s3028_s24 }
 0x1c5   : > { %s3578_s23 = smov %s3581_s26  ;;  %s3579_s24 = smov %s3585_s27 }
 0x1c6   :  { %16 = sbr.rel (!%p14_p10) target bundleno = 3 (0x3), region = 112 }

</bundles_post_ra>
